<compile_context>
chip_gen: v5e
topology: v5e:2x2
jax: 0.10.0
libtpu: 0.0.40
codegen_flags: <defaults>
</compile_context>

<pallas_src>
import functools
import math

import jax
import jax.numpy as jnp
from jax.experimental import pallas as pl
from jax.experimental.pallas import tpu as pltpu


# ----------------------------------------------------------------------------
# Fused Pallas kernel: encoder + mask generator + mask apply + decoder + OLA
# ----------------------------------------------------------------------------
def _fused_kernel(xc_ref, enc0_w_ref, enc_w_ref, mg_in_w_ref, mg_w1_ref,
                  mg_wdw_ref, mg_wrs_ref, mg_out_w_ref, dec_w_ref,
                  dec_fin_w_ref, bias_ref, alpha_ref, o_ref,
                  *, depth, dilations, K, S):
    bf16 = jnp.bfloat16
    F = enc0_w_ref.shape[1]
    Bf = mg_w1_ref.shape[1]
    H = mg_w1_ref.shape[2]
    nblk = len(dilations)

    def prelu(v, a):
        return jnp.where(v >= 0, v, a * v)

    def brow(r, w):                      # packed bias row r, first w lanes
        return bias_ref[r:r + 1, :w]     # [1, w] f32

    # ---------------- encoder ----------------
    xc = xc_ref[0]                                               # [nchunks, 2S]
    L0 = xc.shape[0] - 1
    # strided front conv: frame l = chunks (l, l+1) -> one [L0, 2K] x [2K, F] matmul
    cat0 = jnp.concatenate([xc[0:L0, :], xc[1:L0 + 1, :]], axis=-1).astype(bf16)
    h = jnp.dot(cat0, enc0_w_ref[...], preferred_element_type=jnp.float32)  # [L0, F]
    ai = 0
    for l in range(depth - 1):                                   # valid K=3 convs (no bias)
        Lout = h.shape[0] - 2
        cat = jnp.concatenate([h[0:Lout], h[1:1 + Lout], h[2:2 + Lout]],
                              axis=-1).astype(bf16)              # [Lout, 3F]
        acc = jnp.dot(cat, enc_w_ref[l], preferred_element_type=jnp.float32)
        h = prelu(acc, alpha_ref[ai])
        ai += 1

    feats = h                                                    # [T, F] f32
    T = feats.shape[0]

    # ---------------- TCN mask generator ----------------
    out = brow(0, Bf) + jnp.dot(feats.astype(bf16), mg_in_w_ref[...],
                                preferred_element_type=jnp.float32)        # [T, Bf]
    for i, d in enumerate(dilations):
        a1 = alpha_ref[ai]
        a2 = alpha_ref[ai + 1]
        ai += 2
        # 1x1 conv + PReLU
        h1 = brow(1 + 3 * i, H) + jnp.dot(out.astype(bf16), mg_w1_ref[i],
                                          preferred_element_type=jnp.float32)
        h1 = prelu(h1, a1)
        # depthwise dilated (k=3) conv + PReLU; zero padding built in-register
        zp = jnp.zeros((d, H), jnp.float32)
        hp = jnp.concatenate([zp, h1, zp], axis=0)               # [T+2d, H]
        wdw = mg_wdw_ref[i]                                      # [3, H] f32 (VPU)
        h2 = (wdw[0:1, :] * hp[0:T, :]
              + wdw[1:2, :] * hp[d:d + T, :]
              + wdw[2:3, :] * hp[2 * d:2 * d + T, :]) + brow(2 + 3 * i, H)
        h2 = prelu(h2, a2)
        # merged residual+skip 1x1 conv (weights/biases pre-summed at prep time)
        out = out + brow(3 + 3 * i, Bf) + jnp.dot(h2.astype(bf16), mg_wrs_ref[i],
                                                  preferred_element_type=jnp.float32)
    p = prelu(out, alpha_ref[ai])
    ai += 1
    logits = brow(1 + 3 * nblk, 2 * F) + jnp.dot(p.astype(bf16), mg_out_w_ref[...],
                                                 preferred_element_type=jnp.float32)
    mask = jax.nn.sigmoid(logits)                                # [T, 2F]

    # -------- decoder per stream (mask apply fused) + overlap-add --------
    dec_ai = ai
    zrow = jnp.zeros((1, S), jnp.float32)
    for s in range(2):
        hs = feats * mask[:, s * F:(s + 1) * F]                  # [T, F]
        for l in range(depth - 1):                               # ConvTranspose K=3
            Tt = hs.shape[0]
            To = Tt + 2
            z2 = jnp.zeros((2, F), jnp.float32)
            hp2 = jnp.concatenate([z2, hs, z2], axis=0)          # [Tt+4, F]
            cat = jnp.concatenate([hp2[0:To], hp2[1:1 + To], hp2[2:2 + To]],
                                  axis=-1).astype(bf16)          # [To, 3F]
            acc = jnp.dot(cat, dec_w_ref[l], preferred_element_type=jnp.float32)
            hs = prelu(acc, alpha_ref[dec_ai + l])
        # final stride-S ConvTranspose: per-frame matmul then in-kernel overlap-add
        y = jnp.dot(hs.astype(bf16), dec_fin_w_ref[...],
                    preferred_element_type=jnp.float32)          # [Td, 2K] (c, k)
        for c in range(2):
            yf = y[:, c * K:c * K + S]                           # first  S samples
            ys = y[:, c * K + S:c * K + 2 * S]                   # second S samples
            chunks = (jnp.concatenate([yf, zrow], axis=0)
                      + jnp.concatenate([zrow, ys], axis=0))     # [Td+1, S]
            o_ref[0, s * 2 + c, :, :] = chunks.astype(o_ref.dtype)


# ----------------------------------------------------------------------------
# pallas_call wrapper
# ----------------------------------------------------------------------------
def fused_forward(xc, prep, *, cfg, dilations):
    B, nchunks, _ = xc.shape
    K = cfg["enc_kernel_size"]
    S = K // 2
    depth = cfg["enc_depth"]

    kern = functools.partial(_fused_kernel, depth=depth, dilations=dilations,
                             K=K, S=S)

    def zero_map(nd):
        return lambda b: (0,) * nd

    def full_spec(arr):
        return pl.BlockSpec(arr.shape, zero_map(arr.ndim))

    weight_names = ["enc0_w", "enc_w", "mg_in_w", "mg_w1", "mg_wdw", "mg_wrs",
                    "mg_out_w", "dec_w", "dec_final_w", "biases"]
    in_specs = [pl.BlockSpec((1, nchunks, 2 * S), lambda b: (b, 0, 0))]
    in_specs += [full_spec(prep[n]) for n in weight_names]
    in_specs.append(pl.BlockSpec(memory_space=pltpu.MemorySpace.SMEM))   # alphas

    return pl.pallas_call(
        kern,
        out_shape=jax.ShapeDtypeStruct((B, 4, nchunks, S), jnp.float32),
        grid=(B,),
        in_specs=in_specs,
        out_specs=pl.BlockSpec((1, 4, nchunks, S), lambda b: (b, 0, 0, 0)),
        compiler_params=pltpu.CompilerParams(dimension_semantics=("parallel",)),
    )(xc, *[prep[n] for n in weight_names], prep["alphas"])


# ----------------------------------------------------------------------------
# Parameters (deterministic synthetic init; raw shapes mirror the torch module)
# ----------------------------------------------------------------------------
def init_params(key, cfg):
    F, K = cfg["enc_num_feats"], cfg["enc_kernel_size"]
    Bf, H = cfg["msk_num_feats"], cfg["msk_num_hidden"]
    depth = cfg["enc_depth"]
    nl, ns = cfg["msk_num_layers"], cfg["msk_num_stacks"]

    keys = iter(jax.random.split(key, 256))

    def rnd(shape, fan_in):
        return (jax.random.normal(next(keys), shape, jnp.float32)
                / math.sqrt(float(fan_in))).astype(jnp.float32)

    p = {}
    p["enc0_w"] = rnd((F, 2, K), 2 * K)                          # Conv1d(2,F,K) bias=False
    p["enc_convs"] = [{"w": rnd((F, F, 3), 3 * F), "alpha": 0.25}  # bias=False in module
                      for _ in range(depth - 1)]
    p["mg_in_w"] = rnd((Bf, F), F)
    p["mg_in_b"] = rnd((Bf,), F)
    blocks = []
    for s in range(ns):
        for l in range(nl):
            d = 2 ** l
            no_res = (l == nl - 1 and s == ns - 1)
            blocks.append({
                "dilation": d,
                "w1": rnd((H, Bf), Bf), "b1": rnd((H,), Bf), "a1": 0.25,
                "w_dw": rnd((H, 1, 3), 3), "b_dw": rnd((H,), 3), "a2": 0.25,
                "w_res": None if no_res else rnd((Bf, H), H),
                "b_res": None if no_res else rnd((Bf,), H),
                "w_skip": rnd((Bf, H), H), "b_skip": rnd((Bf,), H),
            })
    p["mg_blocks"] = blocks
    p["mg_out_alpha"] = 0.25
    p["mg_out_w"] = rnd((2 * F, Bf), Bf)
    p["mg_out_b"] = rnd((2 * F,), Bf)
    p["dec_convs"] = [{"w": rnd((F, F, 3), 3 * F), "alpha": 0.25}  # bias=False
                      for _ in range(depth - 1)]
    p["dec_final_w"] = rnd((F, 2, K), F)                         # ConvT(F,2,K) bias=False
    return p


def prepare_params(params, cfg):
    """One-time weight prep: transposes / flips / tap-stacking / res+skip merge /
    bias & alpha packing / bf16 casts happen here, never per forward step."""
    F, K = cfg["enc_num_feats"], cfg["enc_kernel_size"]
    Bf, H = cfg["msk_num_feats"], cfg["msk_num_hidden"]
    bw = max(2 * F, Bf, H)               # packed-bias lane width
    bf16 = jnp.bfloat16
    prep = {}

    def pad_row(v):
        return jnp.pad(v.astype(jnp.float32), (0, bw - v.shape[0]))[None, :]

    # encoder: front conv flattened to match (k, c)-ordered chunk pairs
    prep["enc0_w"] = jnp.transpose(params["enc0_w"], (2, 1, 0)).reshape(K * 2, F).astype(bf16)
    prep["enc_w"] = jnp.stack(
        [jnp.concatenate([layer["w"][:, :, k].T for k in range(3)], axis=0)
         for layer in params["enc_convs"]], axis=0).astype(bf16)         # [D-1, 3F, F]

    # mask generator
    prep["mg_in_w"] = params["mg_in_w"].T.astype(bf16)                   # [F, Bf]
    w1s, wdws, wrss, bias_rows = [], [], [], [pad_row(params["mg_in_b"])]
    for blk in params["mg_blocks"]:
        w1s.append(blk["w1"].T)                                          # [Bf, H]
        wdws.append(blk["w_dw"].reshape(H, 3).T)                         # [3, H]
        # residual and skip are both added to `out` -> pre-sum weights/biases
        w_rs = blk["w_skip"].T
        b_rs = blk["b_skip"]
        if blk["w_res"] is not None:
            w_rs = w_rs + blk["w_res"].T
            b_rs = b_rs + blk["b_res"]
        wrss.append(w_rs)                                                # [H, Bf]
        bias_rows += [pad_row(blk["b1"]), pad_row(blk["b_dw"]), pad_row(b_rs)]
    bias_rows.append(pad_row(params["mg_out_b"]))
    prep["mg_w1"] = jnp.stack(w1s).astype(bf16)
    prep["mg_wdw"] = jnp.stack(wdws).astype(jnp.float32)                 # VPU path, f32
    prep["mg_wrs"] = jnp.stack(wrss).astype(bf16)
    prep["mg_out_w"] = params["mg_out_w"].T.astype(bf16)                 # [Bf, 2F]
    prep["biases"] = jnp.concatenate(bias_rows, axis=0)                  # [2+3*nblk, bw]

    # decoder: ConvTranspose(K=3) == conv on padded input with flipped taps
    prep["dec_w"] = jnp.stack(
        [jnp.concatenate([layer["w"][:, :, 2 - k] for k in range(3)], axis=0)
         for layer in params["dec_convs"]], axis=0).astype(bf16)         # [D-1, 3F, F]
    prep["dec_final_w"] = params["dec_final_w"].reshape(F, 2 * K).astype(bf16)

    # all PReLU alphas in one SMEM vector: enc, (blk a1,a2)*, output, dec
    alphas = [l["alpha"] for l in params["enc_convs"]]
    for blk in params["mg_blocks"]:
        alphas += [blk["a1"], blk["a2"]]
    alphas.append(params["mg_out_alpha"])
    alphas += [l["alpha"] for l in params["dec_convs"]]
    prep["alphas"] = jnp.array(alphas, jnp.float32)
    return prep


# ----------------------------------------------------------------------------
# Forward pass (jit-compiled; 1 pallas_call + minimal XLA glue)
# ----------------------------------------------------------------------------
def forward(prep, x_complex, *, cfg):
    K = cfg["enc_kernel_size"]
    S = K // 2
    nl, ns = cfg["msk_num_layers"], cfg["msk_num_stacks"]
    dilations = tuple(2 ** l for _ in range(ns) for l in range(nl))

    B = x_complex.shape[0]
    frames = x_complex.shape[2]

    # complex [B,1,frames] -> channels-last real [B, frames, 2]
    xr = jnp.real(x_complex)[:, 0, :]
    xi = jnp.imag(x_complex)[:, 0, :]
    x = jnp.stack([xr, xi], axis=-1).astype(jnp.float32)

    # _align_num_frames_with_strides
    is_odd = K % 2
    num_strides = (frames - is_odd) // S
    num_rem = frames - (is_odd + num_strides * S)
    num_pads = 0 if num_rem == 0 else S - num_rem
    if num_pads > 0:
        x = jnp.pad(x, ((0, 0), (0, num_pads), (0, 0)))
    Tpad = frames + num_pads
    # TODO(synk): overlap-add / chunk trick assume the module default K == 2*S (even K).
    assert K == 2 * S and Tpad % S == 0
    nchunks = Tpad // S
    xc = x.reshape(B, nchunks, 2 * S)            # S-sample chunks, (k, c)-ordered

    # one fused kernel: encoder + maskgen + mask apply + decoder + overlap-add
    wave = fused_forward(xc, prep, cfg=cfg, dilations=dilations)  # [B, 4, nchunks, S]
    wave = wave.reshape(B, 2, 2, Tpad)
    if num_pads > 0:
        wave = wave[..., :frames]
    # complex pack kept outside the kernel (complex64 not representable in-kernel)
    return jax.lax.complex(wave[:, :, 0, :], wave[:, :, 1, :])    # [B, 2, frames] c64


# ----------------------------------------------------------------------------
if __name__ == "__main__":
    cfg = dict(
        enc_kernel_size=16,
        enc_num_feats=64,
        enc_depth=3,
        msk_num_feats=32,
        msk_num_hidden=16,
        msk_num_layers=3,
        msk_num_stacks=2,
    )
    key = jax.random.PRNGKey(0)
    kp, kr, ki = jax.random.split(key, 3)
    params = init_params(kp, cfg)
    prep = prepare_params(params, cfg)

    batch, frames = 2, 100
    xr = jax.random.normal(kr, (batch, 1, frames), jnp.float32)
    xi = jax.random.normal(ki, (batch, 1, frames), jnp.float32)
    x = jax.lax.complex(xr, xi)                                   # [2,1,100] c64

    fwd = jax.jit(functools.partial(forward, cfg=cfg))
    out = fwd(prep, x)
    jax.block_until_ready(out)
    assert out.shape == (batch, 2, frames), out.shape
    assert out.dtype == jnp.complex64, out.dtype
    print("KERNEL_OK")
</pallas_src>

<mosaic_0001>
module attributes {stable_mosaic.version = 11 : i64} {
  func.func @_fused_kernel(%arg0: i32, %arg1: memref<1x13x16xf32, #tpu.memory_space<vmem>>, %arg2: memref<32x64xbf16, #tpu.memory_space<vmem>>, %arg3: memref<2x192x64xbf16, #tpu.memory_space<vmem>>, %arg4: memref<64x32xbf16, #tpu.memory_space<vmem>>, %arg5: memref<6x32x16xbf16, #tpu.memory_space<vmem>>, %arg6: memref<6x3x16xf32, #tpu.memory_space<vmem>>, %arg7: memref<6x16x32xbf16, #tpu.memory_space<vmem>>, %arg8: memref<32x128xbf16, #tpu.memory_space<vmem>>, %arg9: memref<2x192x64xbf16, #tpu.memory_space<vmem>>, %arg10: memref<64x32xbf16, #tpu.memory_space<vmem>>, %arg11: memref<20x128xf32, #tpu.memory_space<vmem>>, %arg12: memref<17xf32, #tpu.memory_space<smem>>, %arg13: memref<1x4x13x8xf32, #tpu.memory_space<vmem>>) attributes {dimension_semantics = [#tpu.dimension_semantics<parallel>], iteration_bounds = array<i64: 2>, scalar_prefetch = 0 : i64, scratch_operands = 0 : i64, tpu.core_type = #tpu.core_type<tc>, window_params = [{transform_indices = @transform_0, window_bounds = array<i64: 1, 13, 16>}, {pipeline_mode = #tpu.pipeline_mode<synchronous>, transform_indices = @transform_1, window_bounds = array<i64: 32, 64>}, {pipeline_mode = #tpu.pipeline_mode<synchronous>, transform_indices = @transform_2, window_bounds = array<i64: 2, 192, 64>}, {pipeline_mode = #tpu.pipeline_mode<synchronous>, transform_indices = @transform_3, window_bounds = array<i64: 64, 32>}, {pipeline_mode = #tpu.pipeline_mode<synchronous>, transform_indices = @transform_4, window_bounds = array<i64: 6, 32, 16>}, {pipeline_mode = #tpu.pipeline_mode<synchronous>, transform_indices = @transform_5, window_bounds = array<i64: 6, 3, 16>}, {pipeline_mode = #tpu.pipeline_mode<synchronous>, transform_indices = @transform_6, window_bounds = array<i64: 6, 16, 32>}, {pipeline_mode = #tpu.pipeline_mode<synchronous>, transform_indices = @transform_7, window_bounds = array<i64: 32, 128>}, {pipeline_mode = #tpu.pipeline_mode<synchronous>, transform_indices = @transform_8, window_bounds = array<i64: 2, 192, 64>}, {pipeline_mode = #tpu.pipeline_mode<synchronous>, transform_indices = @transform_9, window_bounds = array<i64: 64, 32>}, {pipeline_mode = #tpu.pipeline_mode<synchronous>, transform_indices = @transform_10, window_bounds = array<i64: 20, 128>}, {transform_indices = @transform_11, window_bounds = array<i64: 17>}, {transform_indices = @transform_12, window_bounds = array<i64: 1, 4, 13, 8>}]} {
    %c0 = arith.constant 0 : index
    %c0_0 = arith.constant 0 : index
    %c0_1 = arith.constant 0 : index
    %0 = vector.load %arg1[%c0, %c0_0, %c0_1] : memref<1x13x16xf32, #tpu.memory_space<vmem>>, vector<1x13x16xf32>
    %1 = vector.shape_cast %0 : vector<1x13x16xf32> to vector<13x16xf32>
    %2 = vector.extract_strided_slice %1 {offsets = [0, 0], sizes = [12, 16], strides = [1, 1]} : vector<13x16xf32> to vector<12x16xf32>
    %3 = vector.extract_strided_slice %1 {offsets = [1, 0], sizes = [12, 16], strides = [1, 1]} : vector<13x16xf32> to vector<12x16xf32>
    %4 = tpu.concatenate %2, %3 in 1 : vector<12x16xf32>, vector<12x16xf32> -> vector<12x32xf32>
    %5 = arith.truncf %4 : vector<12x32xf32> to vector<12x32xbf16>
    %c0_2 = arith.constant 0 : index
    %c0_3 = arith.constant 0 : index
    %6 = vector.load %arg2[%c0_2, %c0_3] : memref<32x64xbf16, #tpu.memory_space<vmem>>, vector<32x64xbf16>
    %cst = arith.constant dense<0.000000e+00> : vector<12x64xf32>
    %7 = tpu.matmul %5, %6, %cst {dimension_numbers = #tpu.dot_dimension_numbers<[1], [0], [0], [1], [0, 0, 1, 1], [], []>} : vector<12x32xbf16>, vector<32x64xbf16>, vector<12x64xf32> -> vector<12x64xf32>
    %8 = vector.extract_strided_slice %7 {offsets = [0, 0], sizes = [10, 64], strides = [1, 1]} : vector<12x64xf32> to vector<10x64xf32>
    %9 = vector.extract_strided_slice %7 {offsets = [1, 0], sizes = [10, 64], strides = [1, 1]} : vector<12x64xf32> to vector<10x64xf32>
    %10 = vector.extract_strided_slice %7 {offsets = [2, 0], sizes = [10, 64], strides = [1, 1]} : vector<12x64xf32> to vector<10x64xf32>
    %11 = tpu.concatenate %8, %9, %10 in 1 : vector<10x64xf32>, vector<10x64xf32>, vector<10x64xf32> -> vector<10x192xf32>
    %12 = arith.truncf %11 : vector<10x192xf32> to vector<10x192xbf16>
    %c0_4 = arith.constant 0 : index
    %c0_5 = arith.constant 0 : index
    %c0_6 = arith.constant 0 : index
    %13 = vector.load %arg3[%c0_4, %c0_5, %c0_6] : memref<2x192x64xbf16, #tpu.memory_space<vmem>>, vector<1x192x64xbf16>
    %14 = vector.shape_cast %13 : vector<1x192x64xbf16> to vector<192x64xbf16>
    %cst_7 = arith.constant dense<0.000000e+00> : vector<10x64xf32>
    %15 = tpu.matmul %12, %14, %cst_7 {dimension_numbers = #tpu.dot_dimension_numbers<[1], [0], [0], [1], [0, 0, 1, 1], [], []>} : vector<10x192xbf16>, vector<192x64xbf16>, vector<10x64xf32> -> vector<10x64xf32>
    %c0_8 = arith.constant 0 : index
    %16 = memref.load %arg12[%c0_8] : memref<17xf32, #tpu.memory_space<smem>>
    %cst_9 = arith.constant 0.000000e+00 : f32
    %17 = vector.broadcast %cst_9 : f32 to vector<10x64xf32>
    %18 = arith.cmpf oge, %15, %17 : vector<10x64xf32>
    %19 = vector.broadcast %16 : f32 to vector<10x64xf32>
    %20 = arith.mulf %19, %15 : vector<10x64xf32>
    %21 = arith.select %18, %15, %20 : vector<10x64xi1>, vector<10x64xf32>
    %22 = vector.extract_strided_slice %21 {offsets = [0, 0], sizes = [8, 64], strides = [1, 1]} : vector<10x64xf32> to vector<8x64xf32>
    %23 = vector.extract_strided_slice %21 {offsets = [1, 0], sizes = [8, 64], strides = [1, 1]} : vector<10x64xf32> to vector<8x64xf32>
    %24 = vector.extract_strided_slice %21 {offsets = [2, 0], sizes = [8, 64], strides = [1, 1]} : vector<10x64xf32> to vector<8x64xf32>
    %25 = tpu.concatenate %22, %23, %24 in 1 : vector<8x64xf32>, vector<8x64xf32>, vector<8x64xf32> -> vector<8x192xf32>
    %26 = arith.truncf %25 : vector<8x192xf32> to vector<8x192xbf16>
    %c1 = arith.constant 1 : index
    %c0_10 = arith.constant 0 : index
    %c0_11 = arith.constant 0 : index
    %27 = vector.load %arg3[%c1, %c0_10, %c0_11] : memref<2x192x64xbf16, #tpu.memory_space<vmem>>, vector<1x192x64xbf16>
    %28 = vector.shape_cast %27 : vector<1x192x64xbf16> to vector<192x64xbf16>
    %cst_12 = arith.constant dense<0.000000e+00> : vector<8x64xf32>
    %29 = tpu.matmul %26, %28, %cst_12 {dimension_numbers = #tpu.dot_dimension_numbers<[1], [0], [0], [1], [0, 0, 1, 1], [], []>} : vector<8x192xbf16>, vector<192x64xbf16>, vector<8x64xf32> -> vector<8x64xf32>
    %c1_13 = arith.constant 1 : index
    %30 = memref.load %arg12[%c1_13] : memref<17xf32, #tpu.memory_space<smem>>
    %cst_14 = arith.constant 0.000000e+00 : f32
    %31 = vector.broadcast %cst_14 : f32 to vector<8x64xf32>
    %32 = arith.cmpf oge, %29, %31 : vector<8x64xf32>
    %33 = vector.broadcast %30 : f32 to vector<8x64xf32>
    %34 = arith.mulf %33, %29 : vector<8x64xf32>
    %35 = arith.select %32, %29, %34 : vector<8x64xi1>, vector<8x64xf32>
    %c0_15 = arith.constant 0 : index
    %c0_16 = arith.constant 0 : index
    %36 = vector.load %arg11[%c0_15, %c0_16] : memref<20x128xf32, #tpu.memory_space<vmem>>, vector<1x32xf32>
    %37 = arith.truncf %35 : vector<8x64xf32> to vector<8x64xbf16>
    %c0_17 = arith.constant 0 : index
    %c0_18 = arith.constant 0 : index
    %38 = vector.load %arg4[%c0_17, %c0_18] : memref<64x32xbf16, #tpu.memory_space<vmem>>, vector<64x32xbf16>
    %cst_19 = arith.constant dense<0.000000e+00> : vector<8x32xf32>
    %39 = tpu.matmul %37, %38, %cst_19 {dimension_numbers = #tpu.dot_dimension_numbers<[1], [0], [0], [1], [0, 0, 1, 1], [], []>} : vector<8x64xbf16>, vector<64x32xbf16>, vector<8x32xf32> -> vector<8x32xf32>
    %40 = vector.broadcast %36 : vector<1x32xf32> to vector<8x32xf32>
    %41 = arith.addf %40, %39 : vector<8x32xf32>
    %c2 = arith.constant 2 : index
    %42 = memref.load %arg12[%c2] : memref<17xf32, #tpu.memory_space<smem>>
    %c3 = arith.constant 3 : index
    %43 = memref.load %arg12[%c3] : memref<17xf32, #tpu.memory_space<smem>>
    %c1_20 = arith.constant 1 : index
    %c0_21 = arith.constant 0 : index
    %44 = vector.load %arg11[%c1_20, %c0_21] : memref<20x128xf32, #tpu.memory_space<vmem>>, vector<1x16xf32>
    %45 = arith.truncf %41 : vector<8x32xf32> to vector<8x32xbf16>
    %c0_22 = arith.constant 0 : index
    %c0_23 = arith.constant 0 : index
    %c0_24 = arith.constant 0 : index
    %46 = vector.load %arg5[%c0_22, %c0_23, %c0_24] : memref<6x32x16xbf16, #tpu.memory_space<vmem>>, vector<1x32x16xbf16>
    %47 = vector.shape_cast %46 : vector<1x32x16xbf16> to vector<32x16xbf16>
    %cst_25 = arith.constant dense<0.000000e+00> : vector<8x16xf32>
    %48 = tpu.matmul %45, %47, %cst_25 {dimension_numbers = #tpu.dot_dimension_numbers<[1], [0], [0], [1], [0, 0, 1, 1], [], []>} : vector<8x32xbf16>, vector<32x16xbf16>, vector<8x16xf32> -> vector<8x16xf32>
    %49 = vector.broadcast %44 : vector<1x16xf32> to vector<8x16xf32>
    %50 = arith.addf %49, %48 : vector<8x16xf32>
    %cst_26 = arith.constant 0.000000e+00 : f32
    %51 = vector.broadcast %cst_26 : f32 to vector<8x16xf32>
    %52 = arith.cmpf oge, %50, %51 : vector<8x16xf32>
    %53 = vector.broadcast %42 : f32 to vector<8x16xf32>
    %54 = arith.mulf %53, %50 : vector<8x16xf32>
    %55 = arith.select %52, %50, %54 : vector<8x16xi1>, vector<8x16xf32>
    %cst_27 = arith.constant 0.000000e+00 : f32
    %56 = vector.broadcast %cst_27 : f32 to vector<1x16xf32>
    %57 = tpu.concatenate %56, %55, %56 in 0 : vector<1x16xf32>, vector<8x16xf32>, vector<1x16xf32> -> vector<10x16xf32>
    %c0_28 = arith.constant 0 : index
    %c0_29 = arith.constant 0 : index
    %c0_30 = arith.constant 0 : index
    %58 = vector.load %arg6[%c0_28, %c0_29, %c0_30] : memref<6x3x16xf32, #tpu.memory_space<vmem>>, vector<1x3x16xf32>
    %59 = vector.shape_cast %58 : vector<1x3x16xf32> to vector<3x16xf32>
    %60 = vector.extract_strided_slice %59 {offsets = [0, 0], sizes = [1, 16], strides = [1, 1]} : vector<3x16xf32> to vector<1x16xf32>
    %61 = vector.extract_strided_slice %57 {offsets = [0, 0], sizes = [8, 16], strides = [1, 1]} : vector<10x16xf32> to vector<8x16xf32>
    %62 = vector.broadcast %60 : vector<1x16xf32> to vector<8x16xf32>
    %63 = arith.mulf %62, %61 : vector<8x16xf32>
    %64 = vector.extract_strided_slice %59 {offsets = [1, 0], sizes = [1, 16], strides = [1, 1]} : vector<3x16xf32> to vector<1x16xf32>
    %65 = vector.extract_strided_slice %57 {offsets = [1, 0], sizes = [8, 16], strides = [1, 1]} : vector<10x16xf32> to vector<8x16xf32>
    %66 = vector.broadcast %64 : vector<1x16xf32> to vector<8x16xf32>
    %67 = arith.mulf %66, %65 : vector<8x16xf32>
    %68 = arith.addf %63, %67 : vector<8x16xf32>
    %69 = vector.extract_strided_slice %59 {offsets = [2, 0], sizes = [1, 16], strides = [1, 1]} : vector<3x16xf32> to vector<1x16xf32>
    %70 = vector.extract_strided_slice %57 {offsets = [2, 0], sizes = [8, 16], strides = [1, 1]} : vector<10x16xf32> to vector<8x16xf32>
    %71 = vector.broadcast %69 : vector<1x16xf32> to vector<8x16xf32>
    %72 = arith.mulf %71, %70 : vector<8x16xf32>
    %73 = arith.addf %68, %72 : vector<8x16xf32>
    %c2_31 = arith.constant 2 : index
    %c0_32 = arith.constant 0 : index
    %74 = vector.load %arg11[%c2_31, %c0_32] : memref<20x128xf32, #tpu.memory_space<vmem>>, vector<1x16xf32>
    %75 = vector.broadcast %74 : vector<1x16xf32> to vector<8x16xf32>
    %76 = arith.addf %73, %75 : vector<8x16xf32>
    %cst_33 = arith.constant 0.000000e+00 : f32
    %77 = vector.broadcast %cst_33 : f32 to vector<8x16xf32>
    %78 = arith.cmpf oge, %76, %77 : vector<8x16xf32>
    %79 = vector.broadcast %43 : f32 to vector<8x16xf32>
    %80 = arith.mulf %79, %76 : vector<8x16xf32>
    %81 = arith.select %78, %76, %80 : vector<8x16xi1>, vector<8x16xf32>
    %c3_34 = arith.constant 3 : index
    %c0_35 = arith.constant 0 : index
    %82 = vector.load %arg11[%c3_34, %c0_35] : memref<20x128xf32, #tpu.memory_space<vmem>>, vector<1x32xf32>
    %83 = vector.broadcast %82 : vector<1x32xf32> to vector<8x32xf32>
    %84 = arith.addf %41, %83 : vector<8x32xf32>
    %85 = arith.truncf %81 : vector<8x16xf32> to vector<8x16xbf16>
    %c0_36 = arith.constant 0 : index
    %c0_37 = arith.constant 0 : index
    %c0_38 = arith.constant 0 : index
    %86 = vector.load %arg7[%c0_36, %c0_37, %c0_38] : memref<6x16x32xbf16, #tpu.memory_space<vmem>>, vector<1x16x32xbf16>
    %87 = vector.shape_cast %86 : vector<1x16x32xbf16> to vector<16x32xbf16>
    %cst_39 = arith.constant dense<0.000000e+00> : vector<8x32xf32>
    %88 = tpu.matmul %85, %87, %cst_39 {dimension_numbers = #tpu.dot_dimension_numbers<[1], [0], [0], [1], [0, 0, 1, 1], [], []>} : vector<8x16xbf16>, vector<16x32xbf16>, vector<8x32xf32> -> vector<8x32xf32>
    %89 = arith.addf %84, %88 : vector<8x32xf32>
    %c4 = arith.constant 4 : index
    %90 = memref.load %arg12[%c4] : memref<17xf32, #tpu.memory_space<smem>>
    %c5 = arith.constant 5 : index
    %91 = memref.load %arg12[%c5] : memref<17xf32, #tpu.memory_space<smem>>
    %c4_40 = arith.constant 4 : index
    %c0_41 = arith.constant 0 : index
    %92 = vector.load %arg11[%c4_40, %c0_41] : memref<20x128xf32, #tpu.memory_space<vmem>>, vector<1x16xf32>
    %93 = arith.truncf %89 : vector<8x32xf32> to vector<8x32xbf16>
    %c1_42 = arith.constant 1 : index
    %c0_43 = arith.constant 0 : index
    %c0_44 = arith.constant 0 : index
    %94 = vector.load %arg5[%c1_42, %c0_43, %c0_44] : memref<6x32x16xbf16, #tpu.memory_space<vmem>>, vector<1x32x16xbf16>
    %95 = vector.shape_cast %94 : vector<1x32x16xbf16> to vector<32x16xbf16>
    %cst_45 = arith.constant dense<0.000000e+00> : vector<8x16xf32>
    %96 = tpu.matmul %93, %95, %cst_45 {dimension_numbers = #tpu.dot_dimension_numbers<[1], [0], [0], [1], [0, 0, 1, 1], [], []>} : vector<8x32xbf16>, vector<32x16xbf16>, vector<8x16xf32> -> vector<8x16xf32>
    %97 = vector.broadcast %92 : vector<1x16xf32> to vector<8x16xf32>
    %98 = arith.addf %97, %96 : vector<8x16xf32>
    %cst_46 = arith.constant 0.000000e+00 : f32
    %99 = vector.broadcast %cst_46 : f32 to vector<8x16xf32>
    %100 = arith.cmpf oge, %98, %99 : vector<8x16xf32>
    %101 = vector.broadcast %90 : f32 to vector<8x16xf32>
    %102 = arith.mulf %101, %98 : vector<8x16xf32>
    %103 = arith.select %100, %98, %102 : vector<8x16xi1>, vector<8x16xf32>
    %cst_47 = arith.constant 0.000000e+00 : f32
    %104 = vector.broadcast %cst_47 : f32 to vector<2x16xf32>
    %105 = tpu.concatenate %104, %103, %104 in 0 : vector<2x16xf32>, vector<8x16xf32>, vector<2x16xf32> -> vector<12x16xf32>
    %c1_48 = arith.constant 1 : index
    %c0_49 = arith.constant 0 : index
    %c0_50 = arith.constant 0 : index
    %106 = vector.load %arg6[%c1_48, %c0_49, %c0_50] : memref<6x3x16xf32, #tpu.memory_space<vmem>>, vector<1x3x16xf32>
    %107 = vector.shape_cast %106 : vector<1x3x16xf32> to vector<3x16xf32>
    %108 = vector.extract_strided_slice %107 {offsets = [0, 0], sizes = [1, 16], strides = [1, 1]} : vector<3x16xf32> to vector<1x16xf32>
    %109 = vector.extract_strided_slice %105 {offsets = [0, 0], sizes = [8, 16], strides = [1, 1]} : vector<12x16xf32> to vector<8x16xf32>
    %110 = vector.broadcast %108 : vector<1x16xf32> to vector<8x16xf32>
    %111 = arith.mulf %110, %109 : vector<8x16xf32>
    %112 = vector.extract_strided_slice %107 {offsets = [1, 0], sizes = [1, 16], strides = [1, 1]} : vector<3x16xf32> to vector<1x16xf32>
    %113 = vector.extract_strided_slice %105 {offsets = [2, 0], sizes = [8, 16], strides = [1, 1]} : vector<12x16xf32> to vector<8x16xf32>
    %114 = vector.broadcast %112 : vector<1x16xf32> to vector<8x16xf32>
    %115 = arith.mulf %114, %113 : vector<8x16xf32>
    %116 = arith.addf %111, %115 : vector<8x16xf32>
    %117 = vector.extract_strided_slice %107 {offsets = [2, 0], sizes = [1, 16], strides = [1, 1]} : vector<3x16xf32> to vector<1x16xf32>
    %118 = vector.extract_strided_slice %105 {offsets = [4, 0], sizes = [8, 16], strides = [1, 1]} : vector<12x16xf32> to vector<8x16xf32>
    %119 = vector.broadcast %117 : vector<1x16xf32> to vector<8x16xf32>
    %120 = arith.mulf %119, %118 : vector<8x16xf32>
    %121 = arith.addf %116, %120 : vector<8x16xf32>
    %c5_51 = arith.constant 5 : index
    %c0_52 = arith.constant 0 : index
    %122 = vector.load %arg11[%c5_51, %c0_52] : memref<20x128xf32, #tpu.memory_space<vmem>>, vector<1x16xf32>
    %123 = vector.broadcast %122 : vector<1x16xf32> to vector<8x16xf32>
    %124 = arith.addf %121, %123 : vector<8x16xf32>
    %cst_53 = arith.constant 0.000000e+00 : f32
    %125 = vector.broadcast %cst_53 : f32 to vector<8x16xf32>
    %126 = arith.cmpf oge, %124, %125 : vector<8x16xf32>
    %127 = vector.broadcast %91 : f32 to vector<8x16xf32>
    %128 = arith.mulf %127, %124 : vector<8x16xf32>
    %129 = arith.select %126, %124, %128 : vector<8x16xi1>, vector<8x16xf32>
    %c6 = arith.constant 6 : index
    %c0_54 = arith.constant 0 : index
    %130 = vector.load %arg11[%c6, %c0_54] : memref<20x128xf32, #tpu.memory_space<vmem>>, vector<1x32xf32>
    %131 = vector.broadcast %130 : vector<1x32xf32> to vector<8x32xf32>
    %132 = arith.addf %89, %131 : vector<8x32xf32>
    %133 = arith.truncf %129 : vector<8x16xf32> to vector<8x16xbf16>
    %c1_55 = arith.constant 1 : index
    %c0_56 = arith.constant 0 : index
    %c0_57 = arith.constant 0 : index
    %134 = vector.load %arg7[%c1_55, %c0_56, %c0_57] : memref<6x16x32xbf16, #tpu.memory_space<vmem>>, vector<1x16x32xbf16>
    %135 = vector.shape_cast %134 : vector<1x16x32xbf16> to vector<16x32xbf16>
    %cst_58 = arith.constant dense<0.000000e+00> : vector<8x32xf32>
    %136 = tpu.matmul %133, %135, %cst_58 {dimension_numbers = #tpu.dot_dimension_numbers<[1], [0], [0], [1], [0, 0, 1, 1], [], []>} : vector<8x16xbf16>, vector<16x32xbf16>, vector<8x32xf32> -> vector<8x32xf32>
    %137 = arith.addf %132, %136 : vector<8x32xf32>
    %c6_59 = arith.constant 6 : index
    %138 = memref.load %arg12[%c6_59] : memref<17xf32, #tpu.memory_space<smem>>
    %c7 = arith.constant 7 : index
    %139 = memref.load %arg12[%c7] : memref<17xf32, #tpu.memory_space<smem>>
    %c7_60 = arith.constant 7 : index
    %c0_61 = arith.constant 0 : index
    %140 = vector.load %arg11[%c7_60, %c0_61] : memref<20x128xf32, #tpu.memory_space<vmem>>, vector<1x16xf32>
    %141 = arith.truncf %137 : vector<8x32xf32> to vector<8x32xbf16>
    %c2_62 = arith.constant 2 : index
    %c0_63 = arith.constant 0 : index
    %c0_64 = arith.constant 0 : index
    %142 = vector.load %arg5[%c2_62, %c0_63, %c0_64] : memref<6x32x16xbf16, #tpu.memory_space<vmem>>, vector<1x32x16xbf16>
    %143 = vector.shape_cast %142 : vector<1x32x16xbf16> to vector<32x16xbf16>
    %cst_65 = arith.constant dense<0.000000e+00> : vector<8x16xf32>
    %144 = tpu.matmul %141, %143, %cst_65 {dimension_numbers = #tpu.dot_dimension_numbers<[1], [0], [0], [1], [0, 0, 1, 1], [], []>} : vector<8x32xbf16>, vector<32x16xbf16>, vector<8x16xf32> -> vector<8x16xf32>
    %145 = vector.broadcast %140 : vector<1x16xf32> to vector<8x16xf32>
    %146 = arith.addf %145, %144 : vector<8x16xf32>
    %cst_66 = arith.constant 0.000000e+00 : f32
    %147 = vector.broadcast %cst_66 : f32 to vector<8x16xf32>
    %148 = arith.cmpf oge, %146, %147 : vector<8x16xf32>
    %149 = vector.broadcast %138 : f32 to vector<8x16xf32>
    %150 = arith.mulf %149, %146 : vector<8x16xf32>
    %151 = arith.select %148, %146, %150 : vector<8x16xi1>, vector<8x16xf32>
    %cst_67 = arith.constant 0.000000e+00 : f32
    %152 = vector.broadcast %cst_67 : f32 to vector<4x16xf32>
    %153 = tpu.concatenate %152, %151, %152 in 0 : vector<4x16xf32>, vector<8x16xf32>, vector<4x16xf32> -> vector<16x16xf32>
    %c2_68 = arith.constant 2 : index
    %c0_69 = arith.constant 0 : index
    %c0_70 = arith.constant 0 : index
    %154 = vector.load %arg6[%c2_68, %c0_69, %c0_70] : memref<6x3x16xf32, #tpu.memory_space<vmem>>, vector<1x3x16xf32>
    %155 = vector.shape_cast %154 : vector<1x3x16xf32> to vector<3x16xf32>
    %156 = vector.extract_strided_slice %155 {offsets = [0, 0], sizes = [1, 16], strides = [1, 1]} : vector<3x16xf32> to vector<1x16xf32>
    %157 = vector.extract_strided_slice %153 {offsets = [0, 0], sizes = [8, 16], strides = [1, 1]} : vector<16x16xf32> to vector<8x16xf32>
    %158 = vector.broadcast %156 : vector<1x16xf32> to vector<8x16xf32>
    %159 = arith.mulf %158, %157 : vector<8x16xf32>
    %160 = vector.extract_strided_slice %155 {offsets = [1, 0], sizes = [1, 16], strides = [1, 1]} : vector<3x16xf32> to vector<1x16xf32>
    %161 = vector.extract_strided_slice %153 {offsets = [4, 0], sizes = [8, 16], strides = [1, 1]} : vector<16x16xf32> to vector<8x16xf32>
    %162 = vector.broadcast %160 : vector<1x16xf32> to vector<8x16xf32>
    %163 = arith.mulf %162, %161 : vector<8x16xf32>
    %164 = arith.addf %159, %163 : vector<8x16xf32>
    %165 = vector.extract_strided_slice %155 {offsets = [2, 0], sizes = [1, 16], strides = [1, 1]} : vector<3x16xf32> to vector<1x16xf32>
    %166 = vector.extract_strided_slice %153 {offsets = [8, 0], sizes = [8, 16], strides = [1, 1]} : vector<16x16xf32> to vector<8x16xf32>
    %167 = vector.broadcast %165 : vector<1x16xf32> to vector<8x16xf32>
    %168 = arith.mulf %167, %166 : vector<8x16xf32>
    %169 = arith.addf %164, %168 : vector<8x16xf32>
    %c8 = arith.constant 8 : index
    %c0_71 = arith.constant 0 : index
    %170 = vector.load %arg11[%c8, %c0_71] : memref<20x128xf32, #tpu.memory_space<vmem>>, vector<1x16xf32>
    %171 = vector.broadcast %170 : vector<1x16xf32> to vector<8x16xf32>
    %172 = arith.addf %169, %171 : vector<8x16xf32>
    %cst_72 = arith.constant 0.000000e+00 : f32
    %173 = vector.broadcast %cst_72 : f32 to vector<8x16xf32>
    %174 = arith.cmpf oge, %172, %173 : vector<8x16xf32>
    %175 = vector.broadcast %139 : f32 to vector<8x16xf32>
    %176 = arith.mulf %175, %172 : vector<8x16xf32>
    %177 = arith.select %174, %172, %176 : vector<8x16xi1>, vector<8x16xf32>
    %c9 = arith.constant 9 : index
    %c0_73 = arith.constant 0 : index
    %178 = vector.load %arg11[%c9, %c0_73] : memref<20x128xf32, #tpu.memory_space<vmem>>, vector<1x32xf32>
    %179 = vector.broadcast %178 : vector<1x32xf32> to vector<8x32xf32>
    %180 = arith.addf %137, %179 : vector<8x32xf32>
    %181 = arith.truncf %177 : vector<8x16xf32> to vector<8x16xbf16>
    %c2_74 = arith.constant 2 : index
    %c0_75 = arith.constant 0 : index
    %c0_76 = arith.constant 0 : index
    %182 = vector.load %arg7[%c2_74, %c0_75, %c0_76] : memref<6x16x32xbf16, #tpu.memory_space<vmem>>, vector<1x16x32xbf16>
    %183 = vector.shape_cast %182 : vector<1x16x32xbf16> to vector<16x32xbf16>
    %cst_77 = arith.constant dense<0.000000e+00> : vector<8x32xf32>
    %184 = tpu.matmul %181, %183, %cst_77 {dimension_numbers = #tpu.dot_dimension_numbers<[1], [0], [0], [1], [0, 0, 1, 1], [], []>} : vector<8x16xbf16>, vector<16x32xbf16>, vector<8x32xf32> -> vector<8x32xf32>
    %185 = arith.addf %180, %184 : vector<8x32xf32>
    %c8_78 = arith.constant 8 : index
    %186 = memref.load %arg12[%c8_78] : memref<17xf32, #tpu.memory_space<smem>>
    %c9_79 = arith.constant 9 : index
    %187 = memref.load %arg12[%c9_79] : memref<17xf32, #tpu.memory_space<smem>>
    %c10 = arith.constant 10 : index
    %c0_80 = arith.constant 0 : index
    %188 = vector.load %arg11[%c10, %c0_80] : memref<20x128xf32, #tpu.memory_space<vmem>>, vector<1x16xf32>
    %189 = arith.truncf %185 : vector<8x32xf32> to vector<8x32xbf16>
    %c3_81 = arith.constant 3 : index
    %c0_82 = arith.constant 0 : index
    %c0_83 = arith.constant 0 : index
    %190 = vector.load %arg5[%c3_81, %c0_82, %c0_83] : memref<6x32x16xbf16, #tpu.memory_space<vmem>>, vector<1x32x16xbf16>
    %191 = vector.shape_cast %190 : vector<1x32x16xbf16> to vector<32x16xbf16>
    %cst_84 = arith.constant dense<0.000000e+00> : vector<8x16xf32>
    %192 = tpu.matmul %189, %191, %cst_84 {dimension_numbers = #tpu.dot_dimension_numbers<[1], [0], [0], [1], [0, 0, 1, 1], [], []>} : vector<8x32xbf16>, vector<32x16xbf16>, vector<8x16xf32> -> vector<8x16xf32>
    %193 = vector.broadcast %188 : vector<1x16xf32> to vector<8x16xf32>
    %194 = arith.addf %193, %192 : vector<8x16xf32>
    %cst_85 = arith.constant 0.000000e+00 : f32
    %195 = vector.broadcast %cst_85 : f32 to vector<8x16xf32>
    %196 = arith.cmpf oge, %194, %195 : vector<8x16xf32>
    %197 = vector.broadcast %186 : f32 to vector<8x16xf32>
    %198 = arith.mulf %197, %194 : vector<8x16xf32>
    %199 = arith.select %196, %194, %198 : vector<8x16xi1>, vector<8x16xf32>
    %cst_86 = arith.constant 0.000000e+00 : f32
    %200 = vector.broadcast %cst_86 : f32 to vector<1x16xf32>
    %201 = tpu.concatenate %200, %199, %200 in 0 : vector<1x16xf32>, vector<8x16xf32>, vector<1x16xf32> -> vector<10x16xf32>
    %c3_87 = arith.constant 3 : index
    %c0_88 = arith.constant 0 : index
    %c0_89 = arith.constant 0 : index
    %202 = vector.load %arg6[%c3_87, %c0_88, %c0_89] : memref<6x3x16xf32, #tpu.memory_space<vmem>>, vector<1x3x16xf32>
    %203 = vector.shape_cast %202 : vector<1x3x16xf32> to vector<3x16xf32>
    %204 = vector.extract_strided_slice %203 {offsets = [0, 0], sizes = [1, 16], strides = [1, 1]} : vector<3x16xf32> to vector<1x16xf32>
    %205 = vector.extract_strided_slice %201 {offsets = [0, 0], sizes = [8, 16], strides = [1, 1]} : vector<10x16xf32> to vector<8x16xf32>
    %206 = vector.broadcast %204 : vector<1x16xf32> to vector<8x16xf32>
    %207 = arith.mulf %206, %205 : vector<8x16xf32>
    %208 = vector.extract_strided_slice %203 {offsets = [1, 0], sizes = [1, 16], strides = [1, 1]} : vector<3x16xf32> to vector<1x16xf32>
    %209 = vector.extract_strided_slice %201 {offsets = [1, 0], sizes = [8, 16], strides = [1, 1]} : vector<10x16xf32> to vector<8x16xf32>
    %210 = vector.broadcast %208 : vector<1x16xf32> to vector<8x16xf32>
    %211 = arith.mulf %210, %209 : vector<8x16xf32>
    %212 = arith.addf %207, %211 : vector<8x16xf32>
    %213 = vector.extract_strided_slice %203 {offsets = [2, 0], sizes = [1, 16], strides = [1, 1]} : vector<3x16xf32> to vector<1x16xf32>
    %214 = vector.extract_strided_slice %201 {offsets = [2, 0], sizes = [8, 16], strides = [1, 1]} : vector<10x16xf32> to vector<8x16xf32>
    %215 = vector.broadcast %213 : vector<1x16xf32> to vector<8x16xf32>
    %216 = arith.mulf %215, %214 : vector<8x16xf32>
    %217 = arith.addf %212, %216 : vector<8x16xf32>
    %c11 = arith.constant 11 : index
    %c0_90 = arith.constant 0 : index
    %218 = vector.load %arg11[%c11, %c0_90] : memref<20x128xf32, #tpu.memory_space<vmem>>, vector<1x16xf32>
    %219 = vector.broadcast %218 : vector<1x16xf32> to vector<8x16xf32>
    %220 = arith.addf %217, %219 : vector<8x16xf32>
    %cst_91 = arith.constant 0.000000e+00 : f32
    %221 = vector.broadcast %cst_91 : f32 to vector<8x16xf32>
    %222 = arith.cmpf oge, %220, %221 : vector<8x16xf32>
    %223 = vector.broadcast %187 : f32 to vector<8x16xf32>
    %224 = arith.mulf %223, %220 : vector<8x16xf32>
    %225 = arith.select %222, %220, %224 : vector<8x16xi1>, vector<8x16xf32>
    %c12 = arith.constant 12 : index
    %c0_92 = arith.constant 0 : index
    %226 = vector.load %arg11[%c12, %c0_92] : memref<20x128xf32, #tpu.memory_space<vmem>>, vector<1x32xf32>
    %227 = vector.broadcast %226 : vector<1x32xf32> to vector<8x32xf32>
    %228 = arith.addf %185, %227 : vector<8x32xf32>
    %229 = arith.truncf %225 : vector<8x16xf32> to vector<8x16xbf16>
    %c3_93 = arith.constant 3 : index
    %c0_94 = arith.constant 0 : index
    %c0_95 = arith.constant 0 : index
    %230 = vector.load %arg7[%c3_93, %c0_94, %c0_95] : memref<6x16x32xbf16, #tpu.memory_space<vmem>>, vector<1x16x32xbf16>
    %231 = vector.shape_cast %230 : vector<1x16x32xbf16> to vector<16x32xbf16>
    %cst_96 = arith.constant dense<0.000000e+00> : vector<8x32xf32>
    %232 = tpu.matmul %229, %231, %cst_96 {dimension_numbers = #tpu.dot_dimension_numbers<[1], [0], [0], [1], [0, 0, 1, 1], [], []>} : vector<8x16xbf16>, vector<16x32xbf16>, vector<8x32xf32> -> vector<8x32xf32>
    %233 = arith.addf %228, %232 : vector<8x32xf32>
    %c10_97 = arith.constant 10 : index
    %234 = memref.load %arg12[%c10_97] : memref<17xf32, #tpu.memory_space<smem>>
    %c11_98 = arith.constant 11 : index
    %235 = memref.load %arg12[%c11_98] : memref<17xf32, #tpu.memory_space<smem>>
    %c13 = arith.constant 13 : index
    %c0_99 = arith.constant 0 : index
    %236 = vector.load %arg11[%c13, %c0_99] : memref<20x128xf32, #tpu.memory_space<vmem>>, vector<1x16xf32>
    %237 = arith.truncf %233 : vector<8x32xf32> to vector<8x32xbf16>
    %c4_100 = arith.constant 4 : index
    %c0_101 = arith.constant 0 : index
    %c0_102 = arith.constant 0 : index
    %238 = vector.load %arg5[%c4_100, %c0_101, %c0_102] : memref<6x32x16xbf16, #tpu.memory_space<vmem>>, vector<1x32x16xbf16>
    %239 = vector.shape_cast %238 : vector<1x32x16xbf16> to vector<32x16xbf16>
    %cst_103 = arith.constant dense<0.000000e+00> : vector<8x16xf32>
    %240 = tpu.matmul %237, %239, %cst_103 {dimension_numbers = #tpu.dot_dimension_numbers<[1], [0], [0], [1], [0, 0, 1, 1], [], []>} : vector<8x32xbf16>, vector<32x16xbf16>, vector<8x16xf32> -> vector<8x16xf32>
    %241 = vector.broadcast %236 : vector<1x16xf32> to vector<8x16xf32>
    %242 = arith.addf %241, %240 : vector<8x16xf32>
    %cst_104 = arith.constant 0.000000e+00 : f32
    %243 = vector.broadcast %cst_104 : f32 to vector<8x16xf32>
    %244 = arith.cmpf oge, %242, %243 : vector<8x16xf32>
    %245 = vector.broadcast %234 : f32 to vector<8x16xf32>
    %246 = arith.mulf %245, %242 : vector<8x16xf32>
    %247 = arith.select %244, %242, %246 : vector<8x16xi1>, vector<8x16xf32>
    %cst_105 = arith.constant 0.000000e+00 : f32
    %248 = vector.broadcast %cst_105 : f32 to vector<2x16xf32>
    %249 = tpu.concatenate %248, %247, %248 in 0 : vector<2x16xf32>, vector<8x16xf32>, vector<2x16xf32> -> vector<12x16xf32>
    %c4_106 = arith.constant 4 : index
    %c0_107 = arith.constant 0 : index
    %c0_108 = arith.constant 0 : index
    %250 = vector.load %arg6[%c4_106, %c0_107, %c0_108] : memref<6x3x16xf32, #tpu.memory_space<vmem>>, vector<1x3x16xf32>
    %251 = vector.shape_cast %250 : vector<1x3x16xf32> to vector<3x16xf32>
    %252 = vector.extract_strided_slice %251 {offsets = [0, 0], sizes = [1, 16], strides = [1, 1]} : vector<3x16xf32> to vector<1x16xf32>
    %253 = vector.extract_strided_slice %249 {offsets = [0, 0], sizes = [8, 16], strides = [1, 1]} : vector<12x16xf32> to vector<8x16xf32>
    %254 = vector.broadcast %252 : vector<1x16xf32> to vector<8x16xf32>
    %255 = arith.mulf %254, %253 : vector<8x16xf32>
    %256 = vector.extract_strided_slice %251 {offsets = [1, 0], sizes = [1, 16], strides = [1, 1]} : vector<3x16xf32> to vector<1x16xf32>
    %257 = vector.extract_strided_slice %249 {offsets = [2, 0], sizes = [8, 16], strides = [1, 1]} : vector<12x16xf32> to vector<8x16xf32>
    %258 = vector.broadcast %256 : vector<1x16xf32> to vector<8x16xf32>
    %259 = arith.mulf %258, %257 : vector<8x16xf32>
    %260 = arith.addf %255, %259 : vector<8x16xf32>
    %261 = vector.extract_strided_slice %251 {offsets = [2, 0], sizes = [1, 16], strides = [1, 1]} : vector<3x16xf32> to vector<1x16xf32>
    %262 = vector.extract_strided_slice %249 {offsets = [4, 0], sizes = [8, 16], strides = [1, 1]} : vector<12x16xf32> to vector<8x16xf32>
    %263 = vector.broadcast %261 : vector<1x16xf32> to vector<8x16xf32>
    %264 = arith.mulf %263, %262 : vector<8x16xf32>
    %265 = arith.addf %260, %264 : vector<8x16xf32>
    %c14 = arith.constant 14 : index
    %c0_109 = arith.constant 0 : index
    %266 = vector.load %arg11[%c14, %c0_109] : memref<20x128xf32, #tpu.memory_space<vmem>>, vector<1x16xf32>
    %267 = vector.broadcast %266 : vector<1x16xf32> to vector<8x16xf32>
    %268 = arith.addf %265, %267 : vector<8x16xf32>
    %cst_110 = arith.constant 0.000000e+00 : f32
    %269 = vector.broadcast %cst_110 : f32 to vector<8x16xf32>
    %270 = arith.cmpf oge, %268, %269 : vector<8x16xf32>
    %271 = vector.broadcast %235 : f32 to vector<8x16xf32>
    %272 = arith.mulf %271, %268 : vector<8x16xf32>
    %273 = arith.select %270, %268, %272 : vector<8x16xi1>, vector<8x16xf32>
    %c15 = arith.constant 15 : index
    %c0_111 = arith.constant 0 : index
    %274 = vector.load %arg11[%c15, %c0_111] : memref<20x128xf32, #tpu.memory_space<vmem>>, vector<1x32xf32>
    %275 = vector.broadcast %274 : vector<1x32xf32> to vector<8x32xf32>
    %276 = arith.addf %233, %275 : vector<8x32xf32>
    %277 = arith.truncf %273 : vector<8x16xf32> to vector<8x16xbf16>
    %c4_112 = arith.constant 4 : index
    %c0_113 = arith.constant 0 : index
    %c0_114 = arith.constant 0 : index
    %278 = vector.load %arg7[%c4_112, %c0_113, %c0_114] : memref<6x16x32xbf16, #tpu.memory_space<vmem>>, vector<1x16x32xbf16>
    %279 = vector.shape_cast %278 : vector<1x16x32xbf16> to vector<16x32xbf16>
    %cst_115 = arith.constant dense<0.000000e+00> : vector<8x32xf32>
    %280 = tpu.matmul %277, %279, %cst_115 {dimension_numbers = #tpu.dot_dimension_numbers<[1], [0], [0], [1], [0, 0, 1, 1], [], []>} : vector<8x16xbf16>, vector<16x32xbf16>, vector<8x32xf32> -> vector<8x32xf32>
    %281 = arith.addf %276, %280 : vector<8x32xf32>
    %c12_116 = arith.constant 12 : index
    %282 = memref.load %arg12[%c12_116] : memref<17xf32, #tpu.memory_space<smem>>
    %c13_117 = arith.constant 13 : index
    %283 = memref.load %arg12[%c13_117] : memref<17xf32, #tpu.memory_space<smem>>
    %c16 = arith.constant 16 : index
    %c0_118 = arith.constant 0 : index
    %284 = vector.load %arg11[%c16, %c0_118] : memref<20x128xf32, #tpu.memory_space<vmem>>, vector<1x16xf32>
    %285 = arith.truncf %281 : vector<8x32xf32> to vector<8x32xbf16>
    %c5_119 = arith.constant 5 : index
    %c0_120 = arith.constant 0 : index
    %c0_121 = arith.constant 0 : index
    %286 = vector.load %arg5[%c5_119, %c0_120, %c0_121] : memref<6x32x16xbf16, #tpu.memory_space<vmem>>, vector<1x32x16xbf16>
    %287 = vector.shape_cast %286 : vector<1x32x16xbf16> to vector<32x16xbf16>
    %cst_122 = arith.constant dense<0.000000e+00> : vector<8x16xf32>
    %288 = tpu.matmul %285, %287, %cst_122 {dimension_numbers = #tpu.dot_dimension_numbers<[1], [0], [0], [1], [0, 0, 1, 1], [], []>} : vector<8x32xbf16>, vector<32x16xbf16>, vector<8x16xf32> -> vector<8x16xf32>
    %289 = vector.broadcast %284 : vector<1x16xf32> to vector<8x16xf32>
    %290 = arith.addf %289, %288 : vector<8x16xf32>
    %cst_123 = arith.constant 0.000000e+00 : f32
    %291 = vector.broadcast %cst_123 : f32 to vector<8x16xf32>
    %292 = arith.cmpf oge, %290, %291 : vector<8x16xf32>
    %293 = vector.broadcast %282 : f32 to vector<8x16xf32>
    %294 = arith.mulf %293, %290 : vector<8x16xf32>
    %295 = arith.select %292, %290, %294 : vector<8x16xi1>, vector<8x16xf32>
    %cst_124 = arith.constant 0.000000e+00 : f32
    %296 = vector.broadcast %cst_124 : f32 to vector<4x16xf32>
    %297 = tpu.concatenate %296, %295, %296 in 0 : vector<4x16xf32>, vector<8x16xf32>, vector<4x16xf32> -> vector<16x16xf32>
    %c5_125 = arith.constant 5 : index
    %c0_126 = arith.constant 0 : index
    %c0_127 = arith.constant 0 : index
    %298 = vector.load %arg6[%c5_125, %c0_126, %c0_127] : memref<6x3x16xf32, #tpu.memory_space<vmem>>, vector<1x3x16xf32>
    %299 = vector.shape_cast %298 : vector<1x3x16xf32> to vector<3x16xf32>
    %300 = vector.extract_strided_slice %299 {offsets = [0, 0], sizes = [1, 16], strides = [1, 1]} : vector<3x16xf32> to vector<1x16xf32>
    %301 = vector.extract_strided_slice %297 {offsets = [0, 0], sizes = [8, 16], strides = [1, 1]} : vector<16x16xf32> to vector<8x16xf32>
    %302 = vector.broadcast %300 : vector<1x16xf32> to vector<8x16xf32>
    %303 = arith.mulf %302, %301 : vector<8x16xf32>
    %304 = vector.extract_strided_slice %299 {offsets = [1, 0], sizes = [1, 16], strides = [1, 1]} : vector<3x16xf32> to vector<1x16xf32>
    %305 = vector.extract_strided_slice %297 {offsets = [4, 0], sizes = [8, 16], strides = [1, 1]} : vector<16x16xf32> to vector<8x16xf32>
    %306 = vector.broadcast %304 : vector<1x16xf32> to vector<8x16xf32>
    %307 = arith.mulf %306, %305 : vector<8x16xf32>
    %308 = arith.addf %303, %307 : vector<8x16xf32>
    %309 = vector.extract_strided_slice %299 {offsets = [2, 0], sizes = [1, 16], strides = [1, 1]} : vector<3x16xf32> to vector<1x16xf32>
    %310 = vector.extract_strided_slice %297 {offsets = [8, 0], sizes = [8, 16], strides = [1, 1]} : vector<16x16xf32> to vector<8x16xf32>
    %311 = vector.broadcast %309 : vector<1x16xf32> to vector<8x16xf32>
    %312 = arith.mulf %311, %310 : vector<8x16xf32>
    %313 = arith.addf %308, %312 : vector<8x16xf32>
    %c17 = arith.constant 17 : index
    %c0_128 = arith.constant 0 : index
    %314 = vector.load %arg11[%c17, %c0_128] : memref<20x128xf32, #tpu.memory_space<vmem>>, vector<1x16xf32>
    %315 = vector.broadcast %314 : vector<1x16xf32> to vector<8x16xf32>
    %316 = arith.addf %313, %315 : vector<8x16xf32>
    %cst_129 = arith.constant 0.000000e+00 : f32
    %317 = vector.broadcast %cst_129 : f32 to vector<8x16xf32>
    %318 = arith.cmpf oge, %316, %317 : vector<8x16xf32>
    %319 = vector.broadcast %283 : f32 to vector<8x16xf32>
    %320 = arith.mulf %319, %316 : vector<8x16xf32>
    %321 = arith.select %318, %316, %320 : vector<8x16xi1>, vector<8x16xf32>
    %c18 = arith.constant 18 : index
    %c0_130 = arith.constant 0 : index
    %322 = vector.load %arg11[%c18, %c0_130] : memref<20x128xf32, #tpu.memory_space<vmem>>, vector<1x32xf32>
    %323 = vector.broadcast %322 : vector<1x32xf32> to vector<8x32xf32>
    %324 = arith.addf %281, %323 : vector<8x32xf32>
    %325 = arith.truncf %321 : vector<8x16xf32> to vector<8x16xbf16>
    %c5_131 = arith.constant 5 : index
    %c0_132 = arith.constant 0 : index
    %c0_133 = arith.constant 0 : index
    %326 = vector.load %arg7[%c5_131, %c0_132, %c0_133] : memref<6x16x32xbf16, #tpu.memory_space<vmem>>, vector<1x16x32xbf16>
    %327 = vector.shape_cast %326 : vector<1x16x32xbf16> to vector<16x32xbf16>
    %cst_134 = arith.constant dense<0.000000e+00> : vector<8x32xf32>
    %328 = tpu.matmul %325, %327, %cst_134 {dimension_numbers = #tpu.dot_dimension_numbers<[1], [0], [0], [1], [0, 0, 1, 1], [], []>} : vector<8x16xbf16>, vector<16x32xbf16>, vector<8x32xf32> -> vector<8x32xf32>
    %329 = arith.addf %324, %328 : vector<8x32xf32>
    %c14_135 = arith.constant 14 : index
    %330 = memref.load %arg12[%c14_135] : memref<17xf32, #tpu.memory_space<smem>>
    %cst_136 = arith.constant 0.000000e+00 : f32
    %331 = vector.broadcast %cst_136 : f32 to vector<8x32xf32>
    %332 = arith.cmpf oge, %329, %331 : vector<8x32xf32>
    %333 = vector.broadcast %330 : f32 to vector<8x32xf32>
    %334 = arith.mulf %333, %329 : vector<8x32xf32>
    %335 = arith.select %332, %329, %334 : vector<8x32xi1>, vector<8x32xf32>
    %c19 = arith.constant 19 : index
    %c0_137 = arith.constant 0 : index
    %336 = vector.load %arg11[%c19, %c0_137] : memref<20x128xf32, #tpu.memory_space<vmem>>, vector<1x128xf32>
    %337 = arith.truncf %335 : vector<8x32xf32> to vector<8x32xbf16>
    %c0_138 = arith.constant 0 : index
    %c0_139 = arith.constant 0 : index
    %338 = vector.load %arg8[%c0_138, %c0_139] : memref<32x128xbf16, #tpu.memory_space<vmem>>, vector<32x128xbf16>
    %cst_140 = arith.constant dense<0.000000e+00> : vector<8x128xf32>
    %339 = tpu.matmul %337, %338, %cst_140 {dimension_numbers = #tpu.dot_dimension_numbers<[1], [0], [0], [1], [0, 0, 1, 1], [], []>} : vector<8x32xbf16>, vector<32x128xbf16>, vector<8x128xf32> -> vector<8x128xf32>
    %340 = vector.broadcast %336 : vector<1x128xf32> to vector<8x128xf32>
    %341 = arith.addf %340, %339 : vector<8x128xf32>
    %342 = arith.negf %341 : vector<8x128xf32>
    %343 = math.exp %342 : vector<8x128xf32>
    %cst_141 = arith.constant 1.000000e+00 : f32
    %344 = vector.broadcast %cst_141 : f32 to vector<8x128xf32>
    %345 = arith.addf %344, %343 : vector<8x128xf32>
    %346 = arith.divf %344, %345 : vector<8x128xf32>
    %cst_142 = arith.constant 0.000000e+00 : f32
    %347 = vector.broadcast %cst_142 : f32 to vector<1x8xf32>
    %348 = vector.extract_strided_slice %346 {offsets = [0, 0], sizes = [8, 64], strides = [1, 1]} : vector<8x128xf32> to vector<8x64xf32>
    %349 = arith.mulf %35, %348 : vector<8x64xf32>
    %cst_143 = arith.constant 0.000000e+00 : f32
    %350 = vector.broadcast %cst_143 : f32 to vector<2x64xf32>
    %351 = tpu.concatenate %350, %349, %350 in 0 : vector<2x64xf32>, vector<8x64xf32>, vector<2x64xf32> -> vector<12x64xf32>
    %352 = vector.extract_strided_slice %351 {offsets = [0, 0], sizes = [10, 64], strides = [1, 1]} : vector<12x64xf32> to vector<10x64xf32>
    %353 = vector.extract_strided_slice %351 {offsets = [1, 0], sizes = [10, 64], strides = [1, 1]} : vector<12x64xf32> to vector<10x64xf32>
    %354 = vector.extract_strided_slice %351 {offsets = [2, 0], sizes = [10, 64], strides = [1, 1]} : vector<12x64xf32> to vector<10x64xf32>
    %355 = tpu.concatenate %352, %353, %354 in 1 : vector<10x64xf32>, vector<10x64xf32>, vector<10x64xf32> -> vector<10x192xf32>
    %356 = arith.truncf %355 : vector<10x192xf32> to vector<10x192xbf16>
    %c0_144 = arith.constant 0 : index
    %c0_145 = arith.constant 0 : index
    %c0_146 = arith.constant 0 : index
    %357 = vector.load %arg9[%c0_144, %c0_145, %c0_146] : memref<2x192x64xbf16, #tpu.memory_space<vmem>>, vector<1x192x64xbf16>
    %358 = vector.shape_cast %357 : vector<1x192x64xbf16> to vector<192x64xbf16>
    %cst_147 = arith.constant dense<0.000000e+00> : vector<10x64xf32>
    %359 = tpu.matmul %356, %358, %cst_147 {dimension_numbers = #tpu.dot_dimension_numbers<[1], [0], [0], [1], [0, 0, 1, 1], [], []>} : vector<10x192xbf16>, vector<192x64xbf16>, vector<10x64xf32> -> vector<10x64xf32>
    %c15_148 = arith.constant 15 : index
    %360 = memref.load %arg12[%c15_148] : memref<17xf32, #tpu.memory_space<smem>>
    %cst_149 = arith.constant 0.000000e+00 : f32
    %361 = vector.broadcast %cst_149 : f32 to vector<10x64xf32>
    %362 = arith.cmpf oge, %359, %361 : vector<10x64xf32>
    %363 = vector.broadcast %360 : f32 to vector<10x64xf32>
    %364 = arith.mulf %363, %359 : vector<10x64xf32>
    %365 = arith.select %362, %359, %364 : vector<10x64xi1>, vector<10x64xf32>
    %cst_150 = arith.constant 0.000000e+00 : f32
    %366 = vector.broadcast %cst_150 : f32 to vector<2x64xf32>
    %367 = tpu.concatenate %366, %365, %366 in 0 : vector<2x64xf32>, vector<10x64xf32>, vector<2x64xf32> -> vector<14x64xf32>
    %368 = vector.extract_strided_slice %367 {offsets = [0, 0], sizes = [12, 64], strides = [1, 1]} : vector<14x64xf32> to vector<12x64xf32>
    %369 = vector.extract_strided_slice %367 {offsets = [1, 0], sizes = [12, 64], strides = [1, 1]} : vector<14x64xf32> to vector<12x64xf32>
    %370 = vector.extract_strided_slice %367 {offsets = [2, 0], sizes = [12, 64], strides = [1, 1]} : vector<14x64xf32> to vector<12x64xf32>
    %371 = tpu.concatenate %368, %369, %370 in 1 : vector<12x64xf32>, vector<12x64xf32>, vector<12x64xf32> -> vector<12x192xf32>
    %372 = arith.truncf %371 : vector<12x192xf32> to vector<12x192xbf16>
    %c1_151 = arith.constant 1 : index
    %c0_152 = arith.constant 0 : index
    %c0_153 = arith.constant 0 : index
    %373 = vector.load %arg9[%c1_151, %c0_152, %c0_153] : memref<2x192x64xbf16, #tpu.memory_space<vmem>>, vector<1x192x64xbf16>
    %374 = vector.shape_cast %373 : vector<1x192x64xbf16> to vector<192x64xbf16>
    %cst_154 = arith.constant dense<0.000000e+00> : vector<12x64xf32>
    %375 = tpu.matmul %372, %374, %cst_154 {dimension_numbers = #tpu.dot_dimension_numbers<[1], [0], [0], [1], [0, 0, 1, 1], [], []>} : vector<12x192xbf16>, vector<192x64xbf16>, vector<12x64xf32> -> vector<12x64xf32>
    %c16_155 = arith.constant 16 : index
    %376 = memref.load %arg12[%c16_155] : memref<17xf32, #tpu.memory_space<smem>>
    %cst_156 = arith.constant 0.000000e+00 : f32
    %377 = vector.broadcast %cst_156 : f32 to vector<12x64xf32>
    %378 = arith.cmpf oge, %375, %377 : vector<12x64xf32>
    %379 = vector.broadcast %376 : f32 to vector<12x64xf32>
    %380 = arith.mulf %379, %375 : vector<12x64xf32>
    %381 = arith.select %378, %375, %380 : vector<12x64xi1>, vector<12x64xf32>
    %382 = arith.truncf %381 : vector<12x64xf32> to vector<12x64xbf16>
    %c0_157 = arith.constant 0 : index
    %c0_158 = arith.constant 0 : index
    %383 = vector.load %arg10[%c0_157, %c0_158] : memref<64x32xbf16, #tpu.memory_space<vmem>>, vector<64x32xbf16>
    %cst_159 = arith.constant dense<0.000000e+00> : vector<12x32xf32>
    %384 = tpu.matmul %382, %383, %cst_159 {dimension_numbers = #tpu.dot_dimension_numbers<[1], [0], [0], [1], [0, 0, 1, 1], [], []>} : vector<12x64xbf16>, vector<64x32xbf16>, vector<12x32xf32> -> vector<12x32xf32>
    %385 = vector.extract_strided_slice %384 {offsets = [0, 0], sizes = [12, 8], strides = [1, 1]} : vector<12x32xf32> to vector<12x8xf32>
    %386 = vector.extract_strided_slice %384 {offsets = [0, 8], sizes = [12, 8], strides = [1, 1]} : vector<12x32xf32> to vector<12x8xf32>
    %387 = tpu.concatenate %385, %347 in 0 : vector<12x8xf32>, vector<1x8xf32> -> vector<13x8xf32>
    %388 = tpu.concatenate %347, %386 in 0 : vector<1x8xf32>, vector<12x8xf32> -> vector<13x8xf32>
    %389 = arith.addf %387, %388 : vector<13x8xf32>
    %c0_160 = arith.constant 0 : index
    %c0_161 = arith.constant 0 : index
    %c0_162 = arith.constant 0 : index
    %c0_163 = arith.constant 0 : index
    %390 = vector.load %arg13[%c0_160, %c0_161, %c0_162, %c0_163] : memref<1x4x13x8xf32, #tpu.memory_space<vmem>>, vector<1x1x13x8xf32>
    %391 = vector.shape_cast %390 : vector<1x1x13x8xf32> to vector<13x8xf32>
    %392 = vector.shape_cast %389 : vector<13x8xf32> to vector<1x1x13x8xf32>
    tpu.vector_store %arg13[%c0_160, %c0_161, %c0_162, %c0_163], %392 {strides = array<i32>} : memref<1x4x13x8xf32, #tpu.memory_space<vmem>>, vector<1x1x13x8xf32>,
    %393 = vector.extract_strided_slice %384 {offsets = [0, 16], sizes = [12, 8], strides = [1, 1]} : vector<12x32xf32> to vector<12x8xf32>
    %394 = vector.extract_strided_slice %384 {offsets = [0, 24], sizes = [12, 8], strides = [1, 1]} : vector<12x32xf32> to vector<12x8xf32>
    %395 = tpu.concatenate %393, %347 in 0 : vector<12x8xf32>, vector<1x8xf32> -> vector<13x8xf32>
    %396 = tpu.concatenate %347, %394 in 0 : vector<1x8xf32>, vector<12x8xf32> -> vector<13x8xf32>
    %397 = arith.addf %395, %396 : vector<13x8xf32>
    %c0_164 = arith.constant 0 : index
    %c1_165 = arith.constant 1 : index
    %c0_166 = arith.constant 0 : index
    %c0_167 = arith.constant 0 : index
    %398 = vector.load %arg13[%c0_164, %c1_165, %c0_166, %c0_167] : memref<1x4x13x8xf32, #tpu.memory_space<vmem>>, vector<1x1x13x8xf32>
    %399 = vector.shape_cast %398 : vector<1x1x13x8xf32> to vector<13x8xf32>
    %400 = vector.shape_cast %397 : vector<13x8xf32> to vector<1x1x13x8xf32>
    tpu.vector_store %arg13[%c0_164, %c1_165, %c0_166, %c0_167], %400 {strides = array<i32>} : memref<1x4x13x8xf32, #tpu.memory_space<vmem>>, vector<1x1x13x8xf32>,
    %401 = vector.extract_strided_slice %346 {offsets = [0, 64], sizes = [8, 64], strides = [1, 1]} : vector<8x128xf32> to vector<8x64xf32>
    %402 = arith.mulf %35, %401 : vector<8x64xf32>
    %cst_168 = arith.constant 0.000000e+00 : f32
    %403 = vector.broadcast %cst_168 : f32 to vector<2x64xf32>
    %404 = tpu.concatenate %403, %402, %403 in 0 : vector<2x64xf32>, vector<8x64xf32>, vector<2x64xf32> -> vector<12x64xf32>
    %405 = vector.extract_strided_slice %404 {offsets = [0, 0], sizes = [10, 64], strides = [1, 1]} : vector<12x64xf32> to vector<10x64xf32>
    %406 = vector.extract_strided_slice %404 {offsets = [1, 0], sizes = [10, 64], strides = [1, 1]} : vector<12x64xf32> to vector<10x64xf32>
    %407 = vector.extract_strided_slice %404 {offsets = [2, 0], sizes = [10, 64], strides = [1, 1]} : vector<12x64xf32> to vector<10x64xf32>
    %408 = tpu.concatenate %405, %406, %407 in 1 : vector<10x64xf32>, vector<10x64xf32>, vector<10x64xf32> -> vector<10x192xf32>
    %409 = arith.truncf %408 : vector<10x192xf32> to vector<10x192xbf16>
    %c0_169 = arith.constant 0 : index
    %c0_170 = arith.constant 0 : index
    %c0_171 = arith.constant 0 : index
    %410 = vector.load %arg9[%c0_169, %c0_170, %c0_171] : memref<2x192x64xbf16, #tpu.memory_space<vmem>>, vector<1x192x64xbf16>
    %411 = vector.shape_cast %410 : vector<1x192x64xbf16> to vector<192x64xbf16>
    %cst_172 = arith.constant dense<0.000000e+00> : vector<10x64xf32>
    %412 = tpu.matmul %409, %411, %cst_172 {dimension_numbers = #tpu.dot_dimension_numbers<[1], [0], [0], [1], [0, 0, 1, 1], [], []>} : vector<10x192xbf16>, vector<192x64xbf16>, vector<10x64xf32> -> vector<10x64xf32>
    %c15_173 = arith.constant 15 : index
    %413 = memref.load %arg12[%c15_173] : memref<17xf32, #tpu.memory_space<smem>>
    %cst_174 = arith.constant 0.000000e+00 : f32
    %414 = vector.broadcast %cst_174 : f32 to vector<10x64xf32>
    %415 = arith.cmpf oge, %412, %414 : vector<10x64xf32>
    %416 = vector.broadcast %413 : f32 to vector<10x64xf32>
    %417 = arith.mulf %416, %412 : vector<10x64xf32>
    %418 = arith.select %415, %412, %417 : vector<10x64xi1>, vector<10x64xf32>
    %cst_175 = arith.constant 0.000000e+00 : f32
    %419 = vector.broadcast %cst_175 : f32 to vector<2x64xf32>
    %420 = tpu.concatenate %419, %418, %419 in 0 : vector<2x64xf32>, vector<10x64xf32>, vector<2x64xf32> -> vector<14x64xf32>
    %421 = vector.extract_strided_slice %420 {offsets = [0, 0], sizes = [12, 64], strides = [1, 1]} : vector<14x64xf32> to vector<12x64xf32>
    %422 = vector.extract_strided_slice %420 {offsets = [1, 0], sizes = [12, 64], strides = [1, 1]} : vector<14x64xf32> to vector<12x64xf32>
    %423 = vector.extract_strided_slice %420 {offsets = [2, 0], sizes = [12, 64], strides = [1, 1]} : vector<14x64xf32> to vector<12x64xf32>
    %424 = tpu.concatenate %421, %422, %423 in 1 : vector<12x64xf32>, vector<12x64xf32>, vector<12x64xf32> -> vector<12x192xf32>
    %425 = arith.truncf %424 : vector<12x192xf32> to vector<12x192xbf16>
    %c1_176 = arith.constant 1 : index
    %c0_177 = arith.constant 0 : index
    %c0_178 = arith.constant 0 : index
    %426 = vector.load %arg9[%c1_176, %c0_177, %c0_178] : memref<2x192x64xbf16, #tpu.memory_space<vmem>>, vector<1x192x64xbf16>
    %427 = vector.shape_cast %426 : vector<1x192x64xbf16> to vector<192x64xbf16>
    %cst_179 = arith.constant dense<0.000000e+00> : vector<12x64xf32>
    %428 = tpu.matmul %425, %427, %cst_179 {dimension_numbers = #tpu.dot_dimension_numbers<[1], [0], [0], [1], [0, 0, 1, 1], [], []>} : vector<12x192xbf16>, vector<192x64xbf16>, vector<12x64xf32> -> vector<12x64xf32>
    %c16_180 = arith.constant 16 : index
    %429 = memref.load %arg12[%c16_180] : memref<17xf32, #tpu.memory_space<smem>>
    %cst_181 = arith.constant 0.000000e+00 : f32
    %430 = vector.broadcast %cst_181 : f32 to vector<12x64xf32>
    %431 = arith.cmpf oge, %428, %430 : vector<12x64xf32>
    %432 = vector.broadcast %429 : f32 to vector<12x64xf32>
    %433 = arith.mulf %432, %428 : vector<12x64xf32>
    %434 = arith.select %431, %428, %433 : vector<12x64xi1>, vector<12x64xf32>
    %435 = arith.truncf %434 : vector<12x64xf32> to vector<12x64xbf16>
    %c0_182 = arith.constant 0 : index
    %c0_183 = arith.constant 0 : index
    %436 = vector.load %arg10[%c0_182, %c0_183] : memref<64x32xbf16, #tpu.memory_space<vmem>>, vector<64x32xbf16>
    %cst_184 = arith.constant dense<0.000000e+00> : vector<12x32xf32>
    %437 = tpu.matmul %435, %436, %cst_184 {dimension_numbers = #tpu.dot_dimension_numbers<[1], [0], [0], [1], [0, 0, 1, 1], [], []>} : vector<12x64xbf16>, vector<64x32xbf16>, vector<12x32xf32> -> vector<12x32xf32>
    %438 = vector.extract_strided_slice %437 {offsets = [0, 0], sizes = [12, 8], strides = [1, 1]} : vector<12x32xf32> to vector<12x8xf32>
    %439 = vector.extract_strided_slice %437 {offsets = [0, 8], sizes = [12, 8], strides = [1, 1]} : vector<12x32xf32> to vector<12x8xf32>
    %440 = tpu.concatenate %438, %347 in 0 : vector<12x8xf32>, vector<1x8xf32> -> vector<13x8xf32>
    %441 = tpu.concatenate %347, %439 in 0 : vector<1x8xf32>, vector<12x8xf32> -> vector<13x8xf32>
    %442 = arith.addf %440, %441 : vector<13x8xf32>
    %c0_185 = arith.constant 0 : index
    %c2_186 = arith.constant 2 : index
    %c0_187 = arith.constant 0 : index
    %c0_188 = arith.constant 0 : index
    %443 = vector.load %arg13[%c0_185, %c2_186, %c0_187, %c0_188] : memref<1x4x13x8xf32, #tpu.memory_space<vmem>>, vector<1x1x13x8xf32>
    %444 = vector.shape_cast %443 : vector<1x1x13x8xf32> to vector<13x8xf32>
    %445 = vector.shape_cast %442 : vector<13x8xf32> to vector<1x1x13x8xf32>
    tpu.vector_store %arg13[%c0_185, %c2_186, %c0_187, %c0_188], %445 {strides = array<i32>} : memref<1x4x13x8xf32, #tpu.memory_space<vmem>>, vector<1x1x13x8xf32>,
    %446 = vector.extract_strided_slice %437 {offsets = [0, 16], sizes = [12, 8], strides = [1, 1]} : vector<12x32xf32> to vector<12x8xf32>
    %447 = vector.extract_strided_slice %437 {offsets = [0, 24], sizes = [12, 8], strides = [1, 1]} : vector<12x32xf32> to vector<12x8xf32>
    %448 = tpu.concatenate %446, %347 in 0 : vector<12x8xf32>, vector<1x8xf32> -> vector<13x8xf32>
    %449 = tpu.concatenate %347, %447 in 0 : vector<1x8xf32>, vector<12x8xf32> -> vector<13x8xf32>
    %450 = arith.addf %448, %449 : vector<13x8xf32>
    %c0_189 = arith.constant 0 : index
    %c3_190 = arith.constant 3 : index
    %c0_191 = arith.constant 0 : index
    %c0_192 = arith.constant 0 : index
    %451 = vector.load %arg13[%c0_189, %c3_190, %c0_191, %c0_192] : memref<1x4x13x8xf32, #tpu.memory_space<vmem>>, vector<1x1x13x8xf32>
    %452 = vector.shape_cast %451 : vector<1x1x13x8xf32> to vector<13x8xf32>
    %453 = vector.shape_cast %450 : vector<13x8xf32> to vector<1x1x13x8xf32>
    tpu.vector_store %arg13[%c0_189, %c3_190, %c0_191, %c0_192], %453 {strides = array<i32>} : memref<1x4x13x8xf32, #tpu.memory_space<vmem>>, vector<1x1x13x8xf32>,
    return
  }
  func.func @transform_0(%arg0: i32) -> (i32, i32, i32) {
    %c0_i32 = arith.constant 0 : i32
    %c0_i32_0 = arith.constant 0 : i32
    %c0_i32_1 = arith.constant 0 : i32
    return %arg0, %c0_i32, %c0_i32_0 : i32, i32, i32
  }
  func.func @transform_1(%arg0: i32) -> (i32, i32) {
    %c0_i32 = arith.constant 0 : i32
    %c0_i32_0 = arith.constant 0 : i32
    %c0_i32_1 = arith.constant 0 : i32
    return %c0_i32, %c0_i32_0 : i32, i32
  }
  func.func @transform_2(%arg0: i32) -> (i32, i32, i32) {
    %c0_i32 = arith.constant 0 : i32
    %c0_i32_0 = arith.constant 0 : i32
    %c0_i32_1 = arith.constant 0 : i32
    %c0_i32_2 = arith.constant 0 : i32
    return %c0_i32, %c0_i32_0, %c0_i32_1 : i32, i32, i32
  }
  func.func @transform_3(%arg0: i32) -> (i32, i32) {
    %c0_i32 = arith.constant 0 : i32
    %c0_i32_0 = arith.constant 0 : i32
    %c0_i32_1 = arith.constant 0 : i32
    return %c0_i32, %c0_i32_0 : i32, i32
  }
  func.func @transform_4(%arg0: i32) -> (i32, i32, i32) {
    %c0_i32 = arith.constant 0 : i32
    %c0_i32_0 = arith.constant 0 : i32
    %c0_i32_1 = arith.constant 0 : i32
    %c0_i32_2 = arith.constant 0 : i32
    return %c0_i32, %c0_i32_0, %c0_i32_1 : i32, i32, i32
  }
  func.func @transform_5(%arg0: i32) -> (i32, i32, i32) {
    %c0_i32 = arith.constant 0 : i32
    %c0_i32_0 = arith.constant 0 : i32
    %c0_i32_1 = arith.constant 0 : i32
    %c0_i32_2 = arith.constant 0 : i32
    return %c0_i32, %c0_i32_0, %c0_i32_1 : i32, i32, i32
  }
  func.func @transform_6(%arg0: i32) -> (i32, i32, i32) {
    %c0_i32 = arith.constant 0 : i32
    %c0_i32_0 = arith.constant 0 : i32
    %c0_i32_1 = arith.constant 0 : i32
    %c0_i32_2 = arith.constant 0 : i32
    return %c0_i32, %c0_i32_0, %c0_i32_1 : i32, i32, i32
  }
  func.func @transform_7(%arg0: i32) -> (i32, i32) {
    %c0_i32 = arith.constant 0 : i32
    %c0_i32_0 = arith.constant 0 : i32
    %c0_i32_1 = arith.constant 0 : i32
    return %c0_i32, %c0_i32_0 : i32, i32
  }
  func.func @transform_8(%arg0: i32) -> (i32, i32, i32) {
    %c0_i32 = arith.constant 0 : i32
    %c0_i32_0 = arith.constant 0 : i32
    %c0_i32_1 = arith.constant 0 : i32
    %c0_i32_2 = arith.constant 0 : i32
    return %c0_i32, %c0_i32_0, %c0_i32_1 : i32, i32, i32
  }
  func.func @transform_9(%arg0: i32) -> (i32, i32) {
    %c0_i32 = arith.constant 0 : i32
    %c0_i32_0 = arith.constant 0 : i32
    %c0_i32_1 = arith.constant 0 : i32
    return %c0_i32, %c0_i32_0 : i32, i32
  }
  func.func @transform_10(%arg0: i32) -> (i32, i32) {
    %c0_i32 = arith.constant 0 : i32
    %c0_i32_0 = arith.constant 0 : i32
    %c0_i32_1 = arith.constant 0 : i32
    return %c0_i32, %c0_i32_0 : i32, i32
  }
  func.func @transform_11(%arg0: i32) -> i32 {
    %c0_i32 = arith.constant 0 : i32
    %c0_i32_0 = arith.constant 0 : i32
    return %c0_i32 : i32
  }
  func.func @transform_12(%arg0: i32) -> (i32, i32, i32, i32) {
    %c0_i32 = arith.constant 0 : i32
    %c0_i32_0 = arith.constant 0 : i32
    %c0_i32_1 = arith.constant 0 : i32
    %c0_i32_2 = arith.constant 0 : i32
    return %arg0, %c0_i32, %c0_i32_0, %c0_i32_1 : i32, i32, i32, i32
  }
}

</mosaic_0001>

<bundles_post_ra>
// kernel: custom-call.1
= control target key start
LH: loop header
LB: loop body
LE: loop exit
PB: predicated region body
PF: predicated region fallthrough
CT: control target
= control target key end

     0   :  { %s56_s0 = inlined_call_operand.hbm [shape: c64[2,1,100], index: 0, kind: input, shape index: {}]   ;;  %s57_s1 = inlined_call_operand.vmem [shape: f32[2,1,100], index: 1, kind: output, shape index: {}]  }
   0x1   :  { %s2_s8 = scalar_lea.hbm %s56_s0, 2 }
   0x2   :  { %3 = vsyncpa [#allocation0], 0  ;;  %s5_s9 = sshll.u32 %s2_s8, 4  ;;  %s7_s12 = sshll.u32 %s57_s1, 4  ;;  %s6_s9 = int_to_ptr.hbm [resolvable:$true] %s5_s9  ;;  %s8_s12 = int_to_ptr.vmem [resolvable:$true] %s7_s12 }
   0x3   :  { %10 = dma.hbm_to_vmem [thread:$0]  %s6_s9, 32, %s8_s12, [#allocation0] }
   0x4   :  { %38 = dma.done.wait [#allocation0], 32  }
   0x5   :  { %39 = vsyncadd [#allocation0], 4294967264 }
   0x6   :  { %13 = vsyncpa [#allocation0], 1 }

// kernel: custom-call
= control target key start
LH: loop header
LB: loop body
LE: loop exit
PB: predicated region body
PF: predicated region fallthrough
CT: control target
= control target key end

     0   :  { %2 = vsyncpa [#allocation0], 0  ;;  %s55_s0 = inlined_call_operand.hbm [shape: c64[2,1,100], index: 0, kind: input, shape index: {}]   ;;  %s56_s1 = inlined_call_operand.vmem [shape: f32[2,1,100], index: 1, kind: output, shape index: {}]  }
   0x1   :  { %s4_s8 = sshll.u32 %s55_s0, 4  ;;  %s6_s11 = sshll.u32 %s56_s1, 4  ;;  %s5_s8 = int_to_ptr.hbm [resolvable:$true] %s4_s8  ;;  %s7_s11 = int_to_ptr.vmem [resolvable:$true] %s6_s11 }
   0x2   :  { %9 = dma.hbm_to_vmem [thread:$0]  %s5_s8, 32, %s7_s11, [#allocation0] }
   0x3   :  { %37 = dma.done.wait [#allocation0], 32  }
   0x4   :  { %38 = vsyncadd [#allocation0], 4294967264 }
   0x5   :  { %12 = vsyncpa [#allocation0], 1 }

// kernel: custom-call.2
= control target key start
LH: loop header
LB: loop body
LE: loop exit
PB: predicated region body
PF: predicated region fallthrough
CT: control target
= control target key end

     0   :  { %s105_s0 = inlined_call_operand.vmem [shape: f32[2,2,100], index: 0, kind: input, shape index: {}]   ;;  %s106_s1 = inlined_call_operand.vmem [shape: f32[2,2,100], index: 1, kind: input, shape index: {}]   ;;  %s107_s2 = inlined_call_operand.hbm [shape: c64[2,2,100], index: 2, kind: output, shape index: {}]  }
   0x1   :  { %s3_s11 = scalar_lea.hbm %s107_s2, 4 }
   0x2   :  { %4 = vsyncpa [#allocation0], 0  ;;  %s6_s14 = sshll.u32 %s105_s0, 4  ;;  %s8_s17 = sshll.u32 %s107_s2, 4  ;;  %s7_s14 = int_to_ptr.vmem [resolvable:$true] %s6_s14  ;;  %s9_s17 = int_to_ptr.hbm [resolvable:$true] %s8_s17 }
   0x3   :  { %11 = dma.vmem_to_hbm [thread:$0]  %s7_s14, 64, %s9_s17, [#allocation0] }
   0x4   :  { %74 = dma.done.wait [#allocation0], 64  }
   0x5   :  { %75 = vsyncadd [#allocation0], 4294967232 }
   0x6   :  { %14 = vsyncpa [#allocation0], 1 }
   0x7   :  { %15 = vsyncpa [#allocation1], 0  ;;  %s17_s20 = sshll.u32 %s106_s1, 4  ;;  %s19_s21 = sshll.u32 %s3_s11, 4  ;;  %s18_s20 = int_to_ptr.vmem [resolvable:$true] %s17_s20  ;;  %s20_s21 = int_to_ptr.hbm [resolvable:$true] %s19_s21 }
   0x8   :  { %22 = dma.vmem_to_hbm [thread:$0]  %s18_s20, 64, %s20_s21, [#allocation1] }
   0x9   :  { %76 = dma.done.wait [#allocation1], 64  }
   0xa   :  { %77 = vsyncadd [#allocation1], 4294967232 }
   0xb   :  { %25 = vsyncpa [#allocation1], 1 }

// kernel: forward.1
= control target key start
LH: loop header
LB: loop body
LE: loop exit
PB: predicated region body
PF: predicated region fallthrough
CT: control target
= control target key end

     0   :  { %17 = vsyncpa [#allocation3], 0  ;;  %s3323_s21 = smov 0   ;;  %s3892_s0 = inlined_call_operand.vmem [shape: f32[2,13,16], index: 0, kind: input, shape index: {}]   ;;  %s3893_s1 = inlined_call_operand.vmem [shape: bf16[32,64], index: 1, kind: input, shape index: {}]   ;;  %s3894_s2 = inlined_call_operand.vmem [shape: bf16[2,192,64], index: 2, kind: input, shape index: {}]   ;;  %s3895_s3 = inlined_call_operand.vmem [shape: bf16[64,32], index: 3, kind: input, shape index: {}]   ;;  %s3896_s4 = inlined_call_operand.vmem [shape: bf16[6,32,16], index: 4, kind: input, shape index: {}]   ;;  %s3897_s5 = inlined_call_operand.vmem [shape: f32[6,3,16], index: 5, kind: input, shape index: {}]   ;;  %s3898_s6 = inlined_call_operand.vmem [shape: bf16[6,16,32], index: 6, kind: input, shape index: {}]   ;;  %s3899_s7 = inlined_call_operand.vmem [shape: bf16[32,128], index: 7, kind: input, shape index: {}]   ;;  %s3900_s8 = inlined_call_operand.vmem [shape: bf16[2,192,64], index: 8, kind: input, shape index: {}]   ;;  %s3901_s9 = inlined_call_operand.vmem [shape: bf16[64,32], index: 9, kind: input, shape index: {}]   ;;  %s3902_s10 = inlined_call_operand.vmem [shape: f32[20,128], index: 10, kind: input, shape index: {}]   ;;  %s3903_s11 = inlined_call_operand.vmem [shape: f32[17], index: 11, kind: input, shape index: {}]   ;;  %s3904_s12 = inlined_call_operand.vmem [shape: f32[2,4,13,8], index: 12, kind: output, shape index: {}]  }
   0x1 LB: > { %s2447_s22 = sadd.s32 4294967295, %s3250_s21   ;;  %p2449_p0 = scmp.ge.s32.totalorder %s3250_s21, 1  ;;  %s3250_s21 = sphi %s3323_s21, %s23_s21  }
   0x2   : > { %p311_p1 = scmp.lt.s32.totalorder %s3250_s21, 3  ;;  %s353_s25 = sshll.u32 %s3903_s11, 4  ;;  %s354_s25 = int_to_ptr.vmem [resolvable:$true] %s353_s25 }
   0x3   : > { %p3155_p3 = scmp.eq.s32.totalorder %s2447_s22, 0  ;;  %s3252_s26 = smov [#allocation2]  }
   0x4   : > { %p312_p2 = pnand %p2449_p0, %p311_p1 }
   0x6   : > { %p3151_p4 = pneg %p312_p2  ;;  %374 = sbr.rel (%p312_p2) target bundleno = 3976 (0xf88), region = 68 }
   0x8   : > { %p3152_p5 = pnand %p3155_p3, %p3151_p4 }
   0xa   : > { %3154 = dma.vmem_to_smem (!%p3152_p5), %s354_s25, 16, %s3252_s26, [#allocation3]  }
   0xb   : > { %3245 = dma.done.wait (%p3155_p3), [#allocation3], 16  }
   0xc   : > { %3247 = vsyncadd (%p3155_p3), [#allocation3], 4294967280 }
   0xd   : > { %381 = sfence }
   0xe   : > { %p418_p6 = scmp.lt.s32.totalorder %s2447_s22, 1  ;;  %v3042_v0 = vld [vmem:[%s3893_s1 + $0x8] sm:$0xff]  ;;  %vm433_vm0 = vcmask 1046528   ;;  %s3253_s15 = smov 16   ;;  %v3041_v7 = vld [vmem:[%s3893_s1] sm:$0xff]  ;;  %v3054_v8 = vld [vmem:[%s3894_s2 + $0x58] sm:$0xff] }
   0xf   : > { %473 = vmatpush.bf16.msra.mxu0 %v3042_v0  ;;  %620 = vmatpush.bf16.msra.mxu2 %v3054_v8  ;;  %vm443_vm1 = vcmask 130048   ;;  %vm463_vm2 = vcmask 261120   ;;  %v3053_v15 = vld [vmem:[%s3894_s2 + $0x50] sm:$0xff]  ;;  %v3052_v16 = vld [vmem:[%s3894_s2 + $0x48] sm:$0xff]  ;;  %v3051_v17 = vld [vmem:[%s3894_s2 + $0x40] sm:$0xff]  ;;  %vm492_vm3 = vcmask 1045504  }
  0x10   : > { %s3906_s22 = smov (!%p418_p6, %s2447_s22), 1  ;;  %v3050_v18 = vld [vmem:[%s3894_s2 + $0x38] sm:$0xff]  ;;  %v3049_v19 = vld [vmem:[%s3894_s2 + $0x30] sm:$0xff]  ;;  %v3048_v20 = vld [vmem:[%s3894_s2 + $0x28] sm:$0xff]  ;;  %vm498_vm4 = vcmask 523264   ;;  %s3254_s27 = smov 64  }
  0x11   : > { %s3039_s29 = sshll.u32 %s3906_s22, 4  ;;  %602 = vmatpush.bf16.msra.mxu1 %v3050_v18  ;;  %v3047_v21 = vld [vmem:[%s3894_s2 + $0x20] sm:$0xff]  ;;  %v3046_v22 = vld [vmem:[%s3894_s2 + $0x18] sm:$0xff]  ;;  %v3045_v24 = vld [vmem:[%s3894_s2 + $0x10] sm:$0xff]  ;;  %s630_s30 = sld [smem:[#allocation2]]  ;;  %vm881_vm9 = vcmask 1040384  }
  0x12   : > { %s422_s14 = scalar_lea.vmem %s3892_s0, %s3039_s29  ;;  %v3044_v25 = vld [vmem:[%s3894_s2 + $0x8] sm:$0xff]  ;;  %v3043_v35 = vld [vmem:[%s3894_s2] sm:$0xff]  ;;  %v3066_v42 = vld [vmem:[%s3894_s2 + $0xb8] sm:$0xff]  ;;  %s2589_s24 = sld [smem:[#allocation2 + $0x1]]  ;;  %vm989_vm12 = vcmask 1041408   ;;  %vm1011_vm13 = vcmask 1043456  }
  0x13   : > { %v429_v1 = vld [vmem:[%s422_s14] sm:$0xff]  ;;  %v430_v2 = vld [vmem:[%s422_s14 + $0x8] sm:$0x1f]  ;;  %474 = vmatpush.bf16.msra.mxu0 %v3041_v7  ;;  %621 = vmatpush.bf16.msra.mxu2 %v3053_v15  ;;  %v3065_v43 = vld [vmem:[%s3894_s2 + $0xb0] sm:$0xff]  ;;  %s2623_s14 = sld [smem:[#allocation2 + $0x4]] }
  0x14   : > { %v434_v3 = vrot.slane %v429_v1, 1  ;;  %v435_v4 = vrot.slane %v430_v2, 1  ;;  %v3064_v44 = vld [vmem:[%s3894_s2 + $0xa8] sm:$0xff]  ;;  %v3063_v45 = vld [vmem:[%s3894_s2 + $0xa0] sm:$0xff]  ;;  %v3062_v46 = vld [vmem:[%s3894_s2 + $0x98] sm:$0xff]  ;;  %s2624_s26 = sld [smem:[#allocation2 + $0x5]] }
  0x15   : > { %603 = vmatpush.bf16.msra.mxu1 %v3049_v19  ;;  %753 = vmatpush.bf16.msra.mxu3 %v3062_v46  ;;  %v3061_v47 = vld [vmem:[%s3894_s2 + $0x90] sm:$0xff]  ;;  %v3060_v48 = vld [vmem:[%s3894_s2 + $0x88] sm:$0xff]  ;;  %v3059_v49 = vld [vmem:[%s3894_s2 + $0x80] sm:$0xff]  ;;  %s2646_s17 = sld [smem:[#allocation2 + $0x6]] }
  0x16   : > { %v436_v5 = vsel %vm433_vm0, %v434_v3, %v435_v4  ;;  %v3058_v52 = vld [vmem:[%s3894_s2 + $0x78] sm:$0xff]  ;;  %v3057_v55 = vld [vmem:[%s3894_s2 + $0x70] sm:$0xff]  ;;  %v3056_v60 = vld [vmem:[%s3894_s2 + $0x68] sm:$0xff]  ;;  %s2647_s29 = sld [smem:[#allocation2 + $0x7]] }
  0x17   : > { %v3171_v6 = vpack.i.bf16 %v435_v4, %v436_v5  ;;  %622 = vmatpush.bf16.msra.mxu2 %v3052_v16  ;;  %770 = vmatpush.bf16.msrb.mxu0 %v3066_v42  ;;  %v633_v54 = vstv %s630_s30  ;;  %v3055_v7 = vld [vmem:[%s3894_s2 + $0x60] sm:$0xff]  ;;  %v3070_v8 = vld [vmem:[%s3895_s3 + $0x18] sm:$0xff]  ;;  %v3068_v15 = vld [vmem:[%s3895_s3 + $0x8] sm:$0xff]  ;;  %s2607_s30 = sld [smem:[#allocation2 + $0x2]] }
  0x18   : > { %v3067_v16 = vld [vmem:[%s3895_s3] sm:$0xff]  ;;  %s2669_s19 = sld [smem:[#allocation2 + $0x8]] }
  0x19   : > { %3172 = vrot.lane.b32.xlu0 %v3171_v6, %s3253_s15  ;;  %604 = vmatpush.bf16.msra.mxu1 %v3048_v20  ;;  %v3071_v18 = vld [vmem:[%s3896_s4] sm:$0xff]  ;;  %v781_v20 = vstv %s2589_s24  ;;  %s2608_s24 = sld [smem:[#allocation2 + $0x3]] }
  0x1a   : > { %754 = vmatpush.bf16.msra.mxu3 %v3061_v47  ;;  %s2670_s13 = sld [smem:[#allocation2 + $0x9]] }
  0x1b   : > { %623 = vmatpush.bf16.msra.mxu2 %v3051_v17  ;;  %771 = vmatpush.bf16.msrb.mxu0 %v3065_v43  ;;  %v3072_v17 = vld [vmem:[%s3896_s4 + $0x8] sm:$0xff]  ;;  %s2692_s23 = sld [smem:[#allocation2 + $0xa]] }
  0x1c   : > { %s2693_s16 = sld [smem:[#allocation2 + $0xb]] }
  0x1d   : > { %605 = vmatpush.bf16.msra.mxu1 %v3047_v21  ;;  %s2715_s25 = sld [smem:[#allocation2 + $0xc]] }
  0x1e   : > { %755 = vmatpush.bf16.msra.mxu3 %v3060_v48  ;;  %s2798_s20 = sld [smem:[#allocation2 + $0xf]] }
  0x1f   : > { %772 = vmatpush.bf16.msrb.mxu0 %v3064_v44  ;;  %825 = vmatpush.bf16.msrb.mxu2 %v3070_v8  ;;  %s2872_s18 = sld [smem:[#allocation2 + $0x10]] }
  0x21   : > { %606 = vmatpush.bf16.msra.mxu1 %v3046_v22 }
  0x22   : > { %756 = vmatpush.bf16.msra.mxu3 %v3059_v49 }
  0x23   : > { %773 = vmatpush.bf16.msrb.mxu0 %v3063_v45 }
  0x25   : > { %607 = vmatpush.bf16.msra.mxu1 %v3045_v24 }
  0x26   : > { %757 = vmatpush.bf16.msra.mxu3 %v3058_v52 }
  0x29   : > { %608 = vmatpush.bf16.msra.mxu1 %v3044_v25 }
  0x2a   : > { %758 = vmatpush.bf16.msra.mxu3 %v3057_v55 }
  0x2d   : > { %609 = vmatpush.bf16.msra.mxu1 %v3043_v35 }
  0x2e   : > { %759 = vmatpush.bf16.msra.mxu3 %v3056_v60 }
  0x32   : > { %760 = vmatpush.bf16.msra.mxu3 %v3055_v7 }
  0x8b   : > { %v3173_v9 = vpop.permute.xlu0 %3172 }
  0x8c   : > { %v3175_v10 = vunpack.i.h.bf16 %v3173_v9  ;;  %v3174_v11 = vunpack.i.l.bf16 %v3173_v9  ;;  %v3069_v9 = vld [vmem:[%s3895_s3 + $0x10] sm:$0xff] }
  0x8d   : > { %826 = vmatpush.bf16.msrb.mxu2 %v3069_v9  ;;  %v3076_v9 = vld [vmem:[%s3898_s6 + $0x8] sm:$0xff] }
  0x8e   : > { %v444_v12 = vsel %vm443_vm1, %v429_v1, %v3174_v11  ;;  %v445_v13 = vsel %vm443_vm1, %v430_v2, %v3175_v10  ;;  %1047 = vmatpush.bf16.msrb.mxu3 %v3076_v9 }
  0x8f   : > { %v446_v14 = vpack.c.bf16 %v445_v13, %v444_v12 }
  0x91   : > { %2466 = vmatmul.msk.bf16.vlgmr.msra.gmra.mxu0 %vm463_vm2, %v446_v14  ;;  %827 = vmatpush.bf16.msrb.mxu2 %v3068_v15 }
  0x92   : > { %865 = vmatpush.bf16.msra.mxu0 %v3072_v17 }
  0x95   : > { %828 = vmatpush.bf16.msrb.mxu2 %v3067_v16  ;;  %v2638_v16 = vld [vmem:[%s3897_s5 + $0x4] sm:$0x7] }
  0x96   : > { %866 = vmatpush.bf16.msra.mxu0 %v3071_v18 }
 0x10e   : > { %v476_v23 = vpop.f32.mrf.mxu0 }
 0x10f   : > { %v483_v27 = vrot.slane %v476_v23, 1  ;;  %v493_v28 = vrot.slane %v476_v23, 2 }
 0x116   : > { %v478_v26 = vpop.f32.mrf.mxu0 }
 0x117   : > { %v484_v29 = vrot.slane %v478_v26, 1  ;;  %v494_v30 = vrot.slane %v478_v26, 2 }
 0x119   : > { %v495_v31 = vsel %vm492_vm3, %v493_v28, %v494_v30  ;;  %v485_v32 = vsel %vm433_vm0, %v483_v27, %v484_v29 }
 0x11a   : > { %v502_v33 = vpack.c.bf16 %v494_v30, %v495_v31  ;;  %v3176_v34 = vpack.i.bf16 %v484_v29, %v485_v32  ;;  %v3073_v31 = vld [vmem:[%s3898_s6] sm:$0xff]  ;;  %v3075_v32 = vld [vmem:[%s3896_s4 + $0x18] sm:$0xff] }
 0x11b   : > { %936 = vmatpush.bf16.msrb.mxu1 %v3073_v31 }
 0x11c   : > { %2515 = vmatmul.msk.bf16.vlgmr.msra.gmra.mxu2 %vm498_vm4, %v502_v33  ;;  %3177 = vrot.lane.b32.xlu0 %v3176_v34, %s3254_s27  ;;  %v3074_v33 = vld [vmem:[%s3896_s4 + $0x10] sm:$0xff]  ;;  %v3202_v34 = vld [vmem:[%s3902_s10 + $0x1] ss:$0 sm:$0xff] }
 0x11d   : > { %973 = vmatpush.bf16.msra.mxu2 %v3075_v32 }
 0x121   : > { %974 = vmatpush.bf16.msra.mxu2 %v3074_v33 }
 0x18e   : > { %v3178_v36 = vpop.permute.xlu0 %3177 }
 0x18f   : > { %v3180_v37 = vunpack.i.h.bf16 %v3178_v36  ;;  %v3179_v38 = vunpack.i.l.bf16 %v3178_v36  ;;  %v875_v36 = vstv %s2607_s30  ;;  %s3256_s30 = smov 120  }
 0x191   : > { %v499_v39 = vsel %vm498_vm4, %v476_v23, %v3179_v38  ;;  %v500_v40 = vsel %vm498_vm4, %v478_v26, %v3180_v37  ;;  %v3201_v26 = vld [vmem:[%s3902_s10] ss:$0 sm:$0xff] }
 0x192   : > { %v501_v41 = vpack.c.bf16 %v500_v40, %v499_v39  ;;  %v884_v38 = vld [vmem:[%s3897_s5] sm:$0x7] }
 0x193   : > { %v897_v42 = vperm.slane %v884_v38, 2  ;;  %v885_v46 = vperm.slane %v884_v38, 0 }
 0x194   : > { %610 = vmatmul.bf16.vlgmr.msra.gmra.mxu1 %v501_v41  ;;  %v887_v41 = vperm.slane %v884_v38, 1  ;;  %v3206_v38 = vld [vmem:[%s3902_s10 + $0x5] ss:$0 sm:$0xff] }
 0x19f   : > { %v625_v50 = vpop.f32.mrf.mxu2 }
 0x1a7   : > { %v627_v57 = vpop.f32.mrf.mxu2 }
 0x211   : > { %v611_v51 = vpop.f32.mrf.mxu1 }
 0x212   : > { %v626_v53 = vadd.f32 %v625_v50, %v611_v51 }
 0x214   : > { %v634_v56 = vmul.f32 %v633_v54, %v626_v53  ;;  %vm631_vm5 = vcmp.ge.f32.partialorder %v626_v53, 0.0 }
 0x216   : > { %v636_v61 = vsel %vm631_vm5, %v626_v53, %v634_v56 }
 0x217   : > { %v646_v0 = vrot.slane %v636_v61, 2  ;;  %v640_v2 = vrot.slane %v636_v61, 1 }
 0x219   : > { %v613_v58 = vpop.f32.mrf.mxu1 }
 0x21a   : > { %v628_v59 = vadd.f32 %v627_v57, %v613_v58 }
 0x21c   : > { %vm632_vm6 = vcmp.ge.f32.partialorder %v628_v59, 0.0  ;;  %v635_v62 = vmul.f32 %v633_v54, %v628_v59 }
 0x21e   : > { %v637_v63 = vsel %vm632_vm6, %v628_v59, %v635_v62  ;;  %v3203_v59 = vld [vmem:[%s3902_s10 + $0x2] ss:$0 sm:$0xff]  ;;  %v911_v62 = vstv %s2608_s24 }
 0x21f   : > { %v647_v1 = vrot.slane %v637_v63, 2  ;;  %v641_v3 = vrot.slane %v637_v63, 1 }
 0x221   : > { %v642_v4 = vsel %vm433_vm0, %v640_v2, %v641_v3  ;;  %v648_v5 = vsel %vm492_vm3, %v646_v0, %v647_v1  ;;  %v3204_v3 = vld [vmem:[%s3902_s10 + $0x3] ss:$0 sm:$0xff] }
 0x222   : > { %643 = vrot.lane.b32.xlu1 %v642_v4, %s3254_s27  ;;  %v652_v6 = vpack.c.bf16 %v648_v5, %v648_v5 }
 0x224   : > { %2588 = vmatmul.msk.bf16.vlgmr.msrb.gmra.mxu0 %vm498_vm4, %v652_v6 }
 0x294   : > { %v644_v10 = vpop.permute.xlu1 %643 }
 0x295   : > { %v650_v11 = vsel %vm498_vm4, %v636_v61, %v644_v10  ;;  %v3078_v10 = vld [vmem:[%s3896_s4 + $0x28] sm:$0xff] }
 0x296   : > { %v651_v12 = vpack.c.bf16 %v650_v11, %v650_v11  ;;  %1084 = vmatpush.bf16.msrb.mxu0 %v3078_v10  ;;  %v3077_v11 = vld [vmem:[%s3896_s4 + $0x20] sm:$0xff] }
 0x298   : > { %761 = vmatmul.bf16.vlgmr.msra.gmra.mxu3 %v651_v12  ;;  %v3205_v12 = vld [vmem:[%s3902_s10 + $0x4] ss:$0 sm:$0xff] }
 0x29a   : > { %1085 = vmatpush.bf16.msrb.mxu0 %v3077_v11 }
 0x2a1   : > { %v775_v13 = vpop.f32.mrf.mxu0 }
 0x2a9   : > { %v777_v14 = vpop.f32.mrf.mxu0 }
 0x2aa   : > { %v983_v14 = vstv %s2623_s14 }
 0x31b   : > { %v762_v19 = vpop.f32.mrf.mxu3 }
 0x31c   : > { %v776_v21 = vadd.f32 %v775_v13, %v762_v19  ;;  %v996_v19 = vperm.slane %v2638_v16, 1 }
 0x31e   : > { %vm780_vm7 = vcmp.ge.f32.partialorder %v776_v21, 0.0  ;;  %v782_v22 = vmul.f32 %v781_v20, %v776_v21  ;;  %v1006_v20 = vperm.slane %v2638_v16, 2 }
 0x320   : > { %v3452_v23 = vsel %vm780_vm7, %v776_v21, %v782_v22 }
 0x321   : > { %v785_v24 = vpack.c.bf16 %v3452_v23, %v3452_v23 }
 0x323   : > { %v764_v25 = vpop.f32.mrf.mxu3  ;;  %2606 = vmatmul.msk.bf16.vlgmr.msrb.gmra.mxu2 %vm498_vm4, %v785_v24 }
 0x324   : > { %v994_v25 = vperm.slane %v2638_v16, 0 }
 0x3a6   : > { %v830_v27 = vpop.f32.mrf.mxu2 }
 0x3a7   : > { %v835_v28 = vadd.f32 %v3201_v26, %v830_v27 }
 0x3a9   : > { %v839_v29 = vpack.c.bf16 %v835_v28, %v835_v28  ;;  %v916_v4 = vadd.f32 %v3204_v3, %v835_v28 }
 0x3ab   : > { %2617 = vmatmul.msk.bf16.vlgmr.msra.gmra.mxu0 %vm463_vm2, %v839_v29 }
 0x3ae   : > { %v832_v30 = vpop.f32.mrf.mxu2 }
 0x428   : > { %v868_v35 = vpop.f32.mrf.mxu0 }
 0x429   : > { %v873_v37 = vadd.f32 %v3202_v34, %v868_v35 }
 0x42b   : > { %vm874_vm8 = vcmp.ge.f32.partialorder %v873_v37, 0.0  ;;  %v876_v39 = vmul.f32 %v875_v36, %v873_v37 }
 0x42d   : > { %v877_v40 = vsel %vm874_vm8, %v873_v37, %v876_v39 }
 0x42e   : > { %v879_v43 = vrot.slane %v877_v40, 7 }
 0x430   : > { %v882_v44 = vsel %vm881_vm9, 0.0, %v879_v43  ;;  %v883_v45 = vsel %vm881_vm9, %v879_v43, 0.0  ;;  %v870_v47 = vpop.f32.mrf.mxu0 }
 0x431   : > { %v888_v48 = vmul.f32 %v887_v41, %v882_v44  ;;  %v889_v49 = vmul.f32 %v887_v41, %v883_v45  ;;  %v898_v50 = vmul.f32 %v897_v42, %v882_v44  ;;  %v899_v51 = vmul.f32 %v897_v42, %v883_v45 }
 0x432   : > { %v886_v55 = vmul.f32 %v885_v46, %v882_v44  ;;  %v1021_v41 = vstv %s2624_s26  ;;  %v3207_v46 = vld [vmem:[%s3902_s10 + $0x6] ss:$0 sm:$0xff] }
 0x433   : > { %v892_v52 = vrot.slane %v888_v48, 1  ;;  %v893_v53 = vrot.slane %v889_v49, 1  ;;  %v902_v54 = vrot.slane %v898_v50, 2  ;;  %v903_v56 = vrot.slane %v899_v51, 2 }
 0x435   : > { %v894_v57 = vsel %vm433_vm0, %v892_v52, %v893_v53  ;;  %v904_v60 = vsel %vm492_vm3, %v902_v54, %v903_v56  ;;  %v3079_v52 = vld [vmem:[%s3898_s6 + $0x10] sm:$0xff]  ;;  %v3081_v53 = vld [vmem:[%s3896_s4 + $0x38] sm:$0xff] }
 0x436   : > { %v896_v58 = vadd.f32 %v894_v57, %v886_v55  ;;  %1149 = vmatpush.bf16.msra.mxu1 %v3079_v52  ;;  %1186 = vmatpush.bf16.msrb.mxu2 %v3081_v53  ;;  %v3080_v54 = vld [vmem:[%s3896_s4 + $0x30] sm:$0xff]  ;;  %v3208_v55 = vld [vmem:[%s3902_s10 + $0x7] ss:$0 sm:$0xff]  ;;  %v1094_v57 = vstv %s2646_s17 }
 0x438   : > { %v906_v61 = vadd.f32 %v904_v60, %v896_v58 }
 0x43a   : > { %v909_v63 = vadd.f32 %v3203_v59, %v906_v61  ;;  %1187 = vmatpush.bf16.msrb.mxu2 %v3080_v54  ;;  %v2661_v59 = vld [vmem:[%s3897_s5 + $0x8] sm:$0x7] }
 0x43c   : > { %vm910_vm10 = vcmp.ge.f32.partialorder %v909_v63, 0.0  ;;  %v912_v0 = vmul.f32 %v911_v62, %v909_v63  ;;  %v1106_v62 = vperm.slane %v2661_v59, 1 }
 0x43e   : > { %v913_v1 = vsel %vm910_vm10, %v909_v63, %v912_v0 }
 0x43f   : > { %v917_v2 = vpack.c.bf16 %v913_v1, %v913_v1 }
 0x441   : > { %2622 = vmatmul.msk.bf16.vlgmr.msrb.gmra.mxu1 %vm443_vm1, %v917_v2  ;;  %v1104_v2 = vperm.slane %v2661_v59, 0 }
 0x4be   : > { %v938_v5 = vpop.f32.mrf.mxu1 }
 0x4bf   : > { %v942_v6 = vadd.f32 %v938_v5, %v916_v4 }
 0x4c1   : > { %v946_v7 = vpack.c.bf16 %v942_v6, %v942_v6  ;;  %v1026_v47 = vadd.f32 %v3207_v46, %v942_v6  ;;  %v1116_v6 = vperm.slane %v2661_v59, 2 }
 0x4c3   : > { %2637 = vmatmul.msk.bf16.vlgmr.msra.gmra.mxu2 %vm463_vm2, %v946_v7 }
 0x4c6   : > { %v940_v8 = vpop.f32.mrf.mxu1 }
 0x546   : > { %v976_v13 = vpop.f32.mrf.mxu2 }
 0x547   : > { %v981_v15 = vadd.f32 %v3205_v12, %v976_v13  ;;  %v3209_v13 = vld [vmem:[%s3902_s10 + $0x8] ss:$0 sm:$0xff] }
 0x549   : > { %vm982_vm11 = vcmp.ge.f32.partialorder %v981_v15, 0.0  ;;  %v984_v17 = vmul.f32 %v983_v14, %v981_v15 }
 0x54b   : > { %v985_v18 = vsel %vm982_vm11, %v981_v15, %v984_v17  ;;  %v1123_v15 = vstv %s2647_s29  ;;  %s3255_s29 = smov 104  }
 0x54c   : > { %v987_v21 = vrot.slane %v985_v18, 6 }
 0x54e   : > { %v990_v22 = vsel %vm989_vm12, 0.0, %v987_v21  ;;  %v991_v24 = vsel %vm989_vm12, %v987_v21, 0.0  ;;  %v978_v26 = vpop.f32.mrf.mxu2 }
 0x54f   : > { %v997_v27 = vmul.f32 %v996_v19, %v990_v22  ;;  %v998_v28 = vmul.f32 %v996_v19, %v991_v24  ;;  %v1007_v29 = vmul.f32 %v1006_v20, %v990_v22  ;;  %v1008_v30 = vmul.f32 %v1006_v20, %v991_v24  ;;  %v3210_v20 = vld [vmem:[%s3902_s10 + $0x9] ss:$0 sm:$0xff] }
 0x550   : > { %v995_v34 = vmul.f32 %v994_v25, %v990_v22 }
 0x551   : > { %v1001_v31 = vrot.slane %v997_v27, 2  ;;  %v1002_v32 = vrot.slane %v998_v28, 2  ;;  %v1012_v33 = vrot.slane %v1007_v29, 4  ;;  %v1013_v35 = vrot.slane %v1008_v30, 4  ;;  %v3082_v27 = vld [vmem:[%s3898_s6 + $0x18] sm:$0xff]  ;;  %v3084_v28 = vld [vmem:[%s3896_s4 + $0x48] sm:$0xff] }
 0x552   : > { %1258 = vmatpush.bf16.msra.mxu3 %v3082_v27  ;;  %1295 = vmatpush.bf16.msra.mxu0 %v3084_v28  ;;  %v3083_v29 = vld [vmem:[%s3896_s4 + $0x40] sm:$0xff]  ;;  %v3211_v30 = vld [vmem:[%s3902_s10 + $0xa] ss:$0 sm:$0xff] }
 0x553   : > { %v1003_v36 = vsel %vm492_vm3, %v1001_v31, %v1002_v32  ;;  %v1014_v39 = vsel %vm1011_vm13, %v1012_v33, %v1013_v35  ;;  %v1196_v32 = vstv %s2669_s19 }
 0x554   : > { %v1005_v37 = vadd.f32 %v1003_v36, %v995_v34  ;;  %v2684_v34 = vld [vmem:[%s3897_s5 + $0xc] sm:$0x7] }
 0x556   : > { %v1016_v40 = vadd.f32 %v1014_v39, %v1005_v37  ;;  %1296 = vmatpush.bf16.msra.mxu0 %v3083_v29  ;;  %v1208_v37 = vperm.slane %v2684_v34, 1 }
 0x558   : > { %v1019_v42 = vadd.f32 %v3206_v38, %v1016_v40  ;;  %v1218_v38 = vperm.slane %v2684_v34, 2 }
 0x55a   : > { %vm1020_vm14 = vcmp.ge.f32.partialorder %v1019_v42, 0.0  ;;  %v1022_v43 = vmul.f32 %v1021_v41, %v1019_v42 }
 0x55c   : > { %v1023_v44 = vsel %vm1020_vm14, %v1019_v42, %v1022_v43  ;;  %v1206_v42 = vperm.slane %v2684_v34, 0  ;;  %v3215_v34 = vld [vmem:[%s3902_s10 + $0xe] ss:$0 sm:$0xff] }
 0x55d   : > { %v1027_v45 = vpack.c.bf16 %v1023_v44, %v1023_v44 }
 0x55f   : > { %2645 = vmatmul.msk.bf16.vlgmr.msrb.gmra.mxu3 %vm443_vm1, %v1027_v45 }
 0x5e2   : > { %v1049_v48 = vpop.f32.mrf.mxu3 }
 0x5e3   : > { %v1053_v49 = vadd.f32 %v1049_v48, %v1026_v47 }
 0x5e5   : > { %v1057_v50 = vpack.c.bf16 %v1053_v49, %v1053_v49  ;;  %v1128_v21 = vadd.f32 %v3210_v20, %v1053_v49 }
 0x5e7   : > { %2660 = vmatmul.msk.bf16.vlgmr.msrb.gmra.mxu0 %vm463_vm2, %v1057_v50 }
 0x5ea   : > { %v1051_v51 = vpop.f32.mrf.mxu3 }
 0x664   : > { %v1087_v56 = vpop.f32.mrf.mxu0 }
 0x665   : > { %v1092_v58 = vadd.f32 %v3208_v55, %v1087_v56  ;;  %v3212_v55 = vld [vmem:[%s3902_s10 + $0xb] ss:$0 sm:$0xff] }
 0x667   : > { %vm1093_vm15 = vcmp.ge.f32.partialorder %v1092_v58, 0.0  ;;  %v1095_v60 = vmul.f32 %v1094_v57, %v1092_v58 }
 0x669   : > { %v1096_v61 = vsel %vm1093_vm15, %v1092_v58, %v1095_v60  ;;  %v1232_v58 = vstv %s2670_s13  ;;  %s3040_s13 = sshll.u32 %s3906_s22, 6  ;;  %s3257_s22 = smov 112  }
 0x66a   : > { %v1098_v63 = vrot.slane %v1096_v61, 4  ;;  %s3862_s17 = scalar_lea.vmem %s3904_s12, %s3040_s13 }
 0x66c   : > { %v1100_v0 = vsel %vm1011_vm13, 0.0, %v1098_v63  ;;  %v1101_v1 = vsel %vm1011_vm13, %v1098_v63, 0.0  ;;  %v1089_v3 = vpop.f32.mrf.mxu0  ;;  %v3213_v63 = vld [vmem:[%s3902_s10 + $0xc] ss:$0 sm:$0xff] }
 0x66d   : > { %v1107_v4 = vmul.f32 %v1106_v62, %v1100_v0  ;;  %v1108_v5 = vmul.f32 %v1106_v62, %v1101_v1  ;;  %v1105_v9 = vmul.f32 %v1104_v2, %v1100_v0  ;;  %v1117_v12 = vmul.f32 %v1116_v6, %v1101_v1  ;;  %v3087_v6 = vld [vmem:[%s3896_s4 + $0x58] sm:$0xff] }
 0x66e   : > { %1404 = vmatpush.bf16.msra.mxu2 %v3087_v6 }
 0x66f   : > { %v1111_v7 = vrot.slane %v1107_v4, 4  ;;  %v1112_v8 = vrot.slane %v1108_v5, 4  ;;  %v3085_v5 = vld [vmem:[%s3898_s6 + $0x20] sm:$0xff] }
 0x670   : > { %1367 = vmatpush.bf16.msrb.mxu1 %v3085_v5 }
 0x671   : > { %v1113_v10 = vsel %vm1011_vm13, %v1111_v7, %v1112_v8  ;;  %v3086_v7 = vld [vmem:[%s3896_s4 + $0x50] sm:$0xff]  ;;  %v3214_v8 = vld [vmem:[%s3902_s10 + $0xd] ss:$0 sm:$0xff] }
 0x672   : > { %v1115_v11 = vadd.f32 %v1113_v10, %v1105_v9  ;;  %1405 = vmatpush.bf16.msra.mxu2 %v3086_v7  ;;  %v1305_v10 = vstv %s2692_s23  ;;  %s2738_s23 = sld [smem:[#allocation2 + $0xe]] }
 0x674   : > { %v1118_v14 = vadd.f32 %v1117_v12, %v1115_v11  ;;  %v2707_v12 = vld [vmem:[%s3897_s5 + $0x10] sm:$0x7] }
 0x675   : > { %v1315_v20 = vperm.slane %v2707_v12, 0 }
 0x676   : > { %v1121_v16 = vadd.f32 %v3209_v13, %v1118_v14 }
 0x678   : > { %vm1122_vm5 = vcmp.ge.f32.partialorder %v1121_v16, 0.0  ;;  %v1124_v17 = vmul.f32 %v1123_v15, %v1121_v16  ;;  %v1317_v15 = vperm.slane %v2707_v12, 1 }
 0x67a   : > { %v1125_v18 = vsel %vm1122_vm5, %v1121_v16, %v1124_v17  ;;  %v1327_v16 = vperm.slane %v2707_v12, 2 }
 0x67b   : > { %v1129_v19 = vpack.c.bf16 %v1125_v18, %v1125_v18 }
 0x67d   : > { %2668 = vmatmul.msk.bf16.vlgmr.msra.gmra.mxu1 %vm443_vm1, %v1129_v19 }
 0x6fa   : > { %v1151_v22 = vpop.f32.mrf.mxu1 }
 0x6fb   : > { %v1155_v24 = vadd.f32 %v1151_v22, %v1128_v21 }
 0x6fd   : > { %v1159_v25 = vpack.c.bf16 %v1155_v24, %v1155_v24  ;;  %v1237_v0 = vadd.f32 %v3213_v63, %v1155_v24 }
 0x6ff   : > { %2683 = vmatmul.msk.bf16.vlgmr.msrb.gmra.mxu2 %vm463_vm2, %v1159_v25 }
 0x702   : > { %v1153_v26 = vpop.f32.mrf.mxu1 }
 0x782   : > { %v1189_v31 = vpop.f32.mrf.mxu2 }
 0x783   : > { %v1194_v33 = vadd.f32 %v3211_v30, %v1189_v31 }
 0x785   : > { %vm1195_vm6 = vcmp.ge.f32.partialorder %v1194_v33, 0.0  ;;  %v1197_v35 = vmul.f32 %v1196_v32, %v1194_v33 }
 0x787   : > { %v1198_v36 = vsel %vm1195_vm6, %v1194_v33, %v1197_v35 }
 0x788   : > { %v1200_v39 = vrot.slane %v1198_v36, 7 }
 0x78a   : > { %v1202_v40 = vsel %vm881_vm9, 0.0, %v1200_v39  ;;  %v1203_v41 = vsel %vm881_vm9, %v1200_v39, 0.0  ;;  %v1191_v43 = vpop.f32.mrf.mxu2 }
 0x78b   : > { %v1209_v44 = vmul.f32 %v1208_v37, %v1202_v40  ;;  %v1210_v45 = vmul.f32 %v1208_v37, %v1203_v41  ;;  %v1219_v46 = vmul.f32 %v1218_v38, %v1202_v40  ;;  %v1220_v47 = vmul.f32 %v1218_v38, %v1203_v41 }
 0x78c   : > { %v1207_v51 = vmul.f32 %v1206_v42, %v1202_v40  ;;  %v1341_v37 = vstv %s2693_s16  ;;  %v3216_v42 = vld [vmem:[%s3902_s10 + $0xf] ss:$0 sm:$0xff]  ;;  %s2716_s16 = sld [smem:[#allocation2 + $0xd]] }
 0x78d   : > { %v1213_v48 = vrot.slane %v1209_v44, 1  ;;  %v1214_v49 = vrot.slane %v1210_v45, 1  ;;  %v1223_v50 = vrot.slane %v1219_v46, 2  ;;  %v1224_v52 = vrot.slane %v1220_v47, 2 }
 0x78f   : > { %v1215_v53 = vsel %vm433_vm0, %v1213_v48, %v1214_v49  ;;  %v1225_v56 = vsel %vm492_vm3, %v1223_v50, %v1224_v52  ;;  %v3088_v48 = vld [vmem:[%s3898_s6 + $0x28] sm:$0xff]  ;;  %v3217_v50 = vld [vmem:[%s3902_s10 + $0x10] ss:$0 sm:$0xff]  ;;  %v1414_v52 = vstv %s2715_s25 }
 0x790   : > { %v1217_v54 = vadd.f32 %v1215_v53, %v1207_v51  ;;  %1469 = vmatpush.bf16.msrb.mxu3 %v3088_v48  ;;  %v3090_v49 = vld [vmem:[%s3899_s7 + $0x8] sm:$0xff] }
 0x791   : > { %1508 = vmatpush.bf16.msrb.mxu0 %v3090_v49 }
 0x792   : > { %v1227_v57 = vadd.f32 %v1225_v56, %v1217_v54  ;;  %v2730_v54 = vld [vmem:[%s3897_s5 + $0x14] sm:$0x7] }
 0x794   : > { %v1230_v59 = vadd.f32 %v3212_v55, %v1227_v57  ;;  %v1426_v57 = vperm.slane %v2730_v54, 1 }
 0x796   : > { %vm1231_vm7 = vcmp.ge.f32.partialorder %v1230_v59, 0.0  ;;  %v1233_v60 = vmul.f32 %v1232_v58, %v1230_v59 }
 0x798   : > { %v1234_v61 = vsel %vm1231_vm7, %v1230_v59, %v1233_v60 }
 0x799   : > { %v1238_v62 = vpack.c.bf16 %v1234_v61, %v1234_v61  ;;  %v1424_v61 = vperm.slane %v2730_v54, 0 }
 0x79b   : > { %2691 = vmatmul.msk.bf16.vlgmr.msra.gmra.mxu3 %vm443_vm1, %v1238_v62 }
 0x81e   : > { %v1260_v1 = vpop.f32.mrf.mxu3 }
 0x81f   : > { %v1264_v2 = vadd.f32 %v1260_v1, %v1237_v0  ;;  %v1436_v1 = vperm.slane %v2730_v54, 2 }
 0x821   : > { %v1268_v3 = vpack.c.bf16 %v1264_v2, %v1264_v2  ;;  %v1346_v43 = vadd.f32 %v3216_v42, %v1264_v2 }
 0x823   : > { %2706 = vmatmul.msk.bf16.vlgmr.msra.gmra.mxu0 %vm463_vm2, %v1268_v3 }
 0x826   : > { %v1262_v4 = vpop.f32.mrf.mxu3 }
 0x8a0   : > { %v1298_v9 = vpop.f32.mrf.mxu0 }
 0x8a1   : > { %v1303_v11 = vadd.f32 %v3214_v8, %v1298_v9  ;;  %v3218_v8 = vld [vmem:[%s3902_s10 + $0x11] ss:$0 sm:$0xff] }
 0x8a3   : > { %vm1304_vm8 = vcmp.ge.f32.partialorder %v1303_v11, 0.0  ;;  %v1306_v13 = vmul.f32 %v1305_v10, %v1303_v11  ;;  %v1443_v10 = vstv %s2716_s16 }
 0x8a5   : > { %v1307_v14 = vsel %vm1304_vm8, %v1303_v11, %v1306_v13 }
 0x8a6   : > { %v1309_v17 = vrot.slane %v1307_v14, 6 }
 0x8a8   : > { %v1311_v18 = vsel %vm989_vm12, 0.0, %v1309_v17  ;;  %v1312_v19 = vsel %vm989_vm12, %v1309_v17, 0.0  ;;  %v1300_v21 = vpop.f32.mrf.mxu0 }
 0x8a9   : > { %v1318_v22 = vmul.f32 %v1317_v15, %v1311_v18  ;;  %v1319_v24 = vmul.f32 %v1317_v15, %v1312_v19  ;;  %v1328_v25 = vmul.f32 %v1327_v16, %v1311_v18  ;;  %v1329_v26 = vmul.f32 %v1327_v16, %v1312_v19  ;;  %v3089_v15 = vld [vmem:[%s3899_s7] sm:$0xff]  ;;  %v3219_v16 = vld [vmem:[%s3902_s10 + $0x12] ss:$0 sm:$0xff] }
 0x8aa   : > { %v1316_v30 = vmul.f32 %v1315_v20, %v1311_v18  ;;  %1509 = vmatpush.bf16.msrb.mxu0 %v3089_v15  ;;  %v1478_v19 = vstv %s2738_s23 }
 0x8ab   : > { %v1322_v27 = vrot.slane %v1318_v22, 2  ;;  %v1323_v28 = vrot.slane %v1319_v24, 2  ;;  %v1332_v29 = vrot.slane %v1328_v25, 4  ;;  %v1333_v31 = vrot.slane %v1329_v26, 4  ;;  %v3102_v26 = vld [vmem:[%s3900_s8 + $0x58] sm:$0xff] }
 0x8ac   : > { %1679 = vmatpush.bf16.msrb.mxu2 %v3102_v26  ;;  %v3114_v26 = vld [vmem:[%s3900_s8 + $0xb8] sm:$0xff] }
 0x8ad   : > { %v1324_v32 = vsel %vm492_vm3, %v1322_v27, %v1323_v28  ;;  %v1334_v35 = vsel %vm1011_vm13, %v1332_v29, %v1333_v31  ;;  %v3101_v27 = vld [vmem:[%s3900_s8 + $0x50] sm:$0xff]  ;;  %v3100_v31 = vld [vmem:[%s3900_s8 + $0x48] sm:$0xff] }
 0x8ae   : > { %v1326_v33 = vadd.f32 %v1324_v32, %v1316_v30  ;;  %v3220_v28 = vld [vmem:[%s3902_s10 + $0x13] ss:$0 sm:$0xff]  ;;  %1844 = vmatpush.bf16.msra.mxu0 %v3114_v26  ;;  %v3116_v26 = vld [vmem:[%s3901_s9 + $0x8] sm:$0xff] }
 0x8b0   : > { %v1336_v36 = vadd.f32 %v1334_v35, %v1326_v33  ;;  %1680 = vmatpush.bf16.msrb.mxu2 %v3101_v27  ;;  %v3099_v33 = vld [vmem:[%s3900_s8 + $0x40] sm:$0xff]  ;;  %v3113_v27 = vld [vmem:[%s3900_s8 + $0xb0] sm:$0xff] }
 0x8b2   : > { %v1339_v38 = vadd.f32 %v3215_v34, %v1336_v36  ;;  %1845 = vmatpush.bf16.msra.mxu0 %v3113_v27 }
 0x8b4   : > { %vm1340_vm10 = vcmp.ge.f32.partialorder %v1339_v38, 0.0  ;;  %v1342_v39 = vmul.f32 %v1341_v37, %v1339_v38  ;;  %1681 = vmatpush.bf16.msrb.mxu2 %v3100_v31  ;;  %v3125_v31 = vld [vmem:[%s3900_s8 + $0x30] sm:$0xff] }
 0x8b6   : > { %v1343_v40 = vsel %vm1340_vm10, %v1339_v38, %v1342_v39 }
 0x8b7   : > { %v1347_v41 = vpack.c.bf16 %v1343_v40, %v1343_v40 }
 0x8b8   : > { %1682 = vmatpush.bf16.msrb.mxu2 %v3099_v33  ;;  %v3123_v33 = vld [vmem:[%s3900_s8 + $0x20] sm:$0xff] }
 0x8b9   : > { %2714 = vmatmul.msk.bf16.vlgmr.msrb.gmra.mxu1 %vm443_vm1, %v1347_v41 }
 0x936   : > { %v1369_v44 = vpop.f32.mrf.mxu1 }
 0x937   : > { %v1373_v45 = vadd.f32 %v1369_v44, %v1346_v43 }
 0x939   : > { %v1377_v46 = vpack.c.bf16 %v1373_v45, %v1373_v45  ;;  %v1448_v17 = vadd.f32 %v3219_v16, %v1373_v45 }
 0x93b   : > { %2729 = vmatmul.msk.bf16.vlgmr.msra.gmra.mxu2 %vm463_vm2, %v1377_v46 }
 0x93e   : > { %v1371_v47 = vpop.f32.mrf.mxu1 }
 0x9be   : > { %v1407_v51 = vpop.f32.mrf.mxu2 }
 0x9bf   : > { %v1412_v53 = vadd.f32 %v3217_v50, %v1407_v51 }
 0x9c1   : > { %vm1413_vm11 = vcmp.ge.f32.partialorder %v1412_v53, 0.0  ;;  %v1415_v55 = vmul.f32 %v1414_v52, %v1412_v53 }
 0x9c3   : > { %v1416_v56 = vsel %vm1413_vm11, %v1412_v53, %v1415_v55 }
 0x9c4   : > { %v1418_v58 = vrot.slane %v1416_v56, 4 }
 0x9c6   : > { %v1420_v59 = vsel %vm1011_vm13, 0.0, %v1418_v58  ;;  %v1421_v60 = vsel %vm1011_vm13, %v1418_v58, 0.0  ;;  %v1409_v62 = vpop.f32.mrf.mxu2 }
 0x9c7   : > { %v1427_v63 = vmul.f32 %v1426_v57, %v1420_v59  ;;  %v1428_v0 = vmul.f32 %v1426_v57, %v1421_v60  ;;  %v1425_v4 = vmul.f32 %v1424_v61, %v1420_v59  ;;  %v1437_v7 = vmul.f32 %v1436_v1, %v1421_v60  ;;  %v3098_v59 = vld [vmem:[%s3900_s8 + $0x38] sm:$0xff]  ;;  %v3097_v60 = vld [vmem:[%s3900_s8 + $0x30] sm:$0xff]  ;;  %v3096_v61 = vld [vmem:[%s3900_s8 + $0x28] sm:$0xff] }
 0x9c8   : > { %1661 = vmatpush.bf16.msra.mxu1 %v3098_v59  ;;  %v3095_v62 = vld [vmem:[%s3900_s8 + $0x20] sm:$0xff]  ;;  %v3092_v1 = vld [vmem:[%s3900_s8 + $0x8] sm:$0xff] }
 0x9c9   : > { %v1431_v2 = vrot.slane %v1427_v63, 4  ;;  %v1432_v3 = vrot.slane %v1428_v0, 4  ;;  %v3094_v63 = vld [vmem:[%s3900_s8 + $0x18] sm:$0xff]  ;;  %v3093_v0 = vld [vmem:[%s3900_s8 + $0x10] sm:$0xff] }
 0x9cb   : > { %v1433_v5 = vsel %vm1011_vm13, %v1431_v2, %v1432_v3 }
 0x9cc   : > { %v1435_v6 = vadd.f32 %v1433_v5, %v1425_v4  ;;  %1662 = vmatpush.bf16.msra.mxu1 %v3097_v60  ;;  %v3091_v5 = vld [vmem:[%s3900_s8] sm:$0xff] }
 0x9ce   : > { %v1438_v9 = vadd.f32 %v1437_v7, %v1435_v6 }
 0x9d0   : > { %v1441_v11 = vadd.f32 %v3218_v8, %v1438_v9  ;;  %1663 = vmatpush.bf16.msra.mxu1 %v3096_v61 }
 0x9d2   : > { %vm1442_vm14 = vcmp.ge.f32.partialorder %v1441_v11, 0.0  ;;  %v1444_v12 = vmul.f32 %v1443_v10, %v1441_v11 }
 0x9d4   : > { %v1445_v13 = vsel %vm1442_vm14, %v1441_v11, %v1444_v12  ;;  %1664 = vmatpush.bf16.msra.mxu1 %v3095_v62  ;;  %v3129_v12 = vld [vmem:[%s3900_s8 + $0x50] sm:$0xff] }
 0x9d5   : > { %v1449_v14 = vpack.c.bf16 %v1445_v13, %v1445_v13  ;;  %v3128_v13 = vld [vmem:[%s3900_s8 + $0x48] sm:$0xff] }
 0x9d7   : > { %2737 = vmatmul.msk.bf16.vlgmr.msrb.gmra.mxu3 %vm443_vm1, %v1449_v14  ;;  %v3127_v14 = vld [vmem:[%s3900_s8 + $0x40] sm:$0xff] }
 0x9d8   : > { %1665 = vmatpush.bf16.msra.mxu1 %v3094_v63 }
 0x9dc   : > { %1666 = vmatpush.bf16.msra.mxu1 %v3093_v0 }
 0x9e0   : > { %1667 = vmatpush.bf16.msra.mxu1 %v3092_v1 }
 0x9e4   : > { %1668 = vmatpush.bf16.msra.mxu1 %v3091_v5  ;;  %v3104_v5 = vld [vmem:[%s3900_s8 + $0x68] sm:$0xff] }
 0xa5a   : > { %v1471_v18 = vpop.f32.mrf.mxu3 }
 0xa5b   : > { %v1475_v20 = vadd.f32 %v1471_v18, %v1448_v17 }
 0xa5d   : > { %vm1477_vm15 = vcmp.ge.f32.partialorder %v1475_v20, 0.0  ;;  %v1479_v21 = vmul.f32 %v1478_v19, %v1475_v20 }
 0xa5f   : > { %v1480_v22 = vsel %vm1477_vm15, %v1475_v20, %v1479_v21  ;;  %vm1929_vm15 = vcmask 61440  }
 0xa60   : > { %v1482_v24 = vpack.c.bf16 %v1480_v22, %v1480_v22 }
 0xa62   : > { %v1473_v25 = vpop.f32.mrf.mxu3  ;;  %2747 = vmatmul.msk.bf16.vlgmr.msrb.gmra.mxu0 %vm463_vm2, %v1482_v24 }
 0xadf   : > { %v1511_v29 = vpop.f32.mrf.mxu0 }
 0xae0   : > { %v1516_v30 = vadd.f32 %v3220_v28, %v1511_v29  ;;  %v3112_v28 = vld [vmem:[%s3900_s8 + $0xa8] sm:$0xff]  ;;  %v3111_v29 = vld [vmem:[%s3900_s8 + $0xa0] sm:$0xff] }
 0xae1   : > { %1846 = vmatpush.bf16.msra.mxu0 %v3112_v28 }
 0xae2   : > { %v2748_v32 = vmul.f32 -1.442695, %v1516_v30  ;;  %v3126_v30 = vld [vmem:[%s3900_s8 + $0x38] sm:$0xff] }
 0xae4   : > { %3221 = vpow2.f32 %v2748_v32  ;;  %v3124_v32 = vld [vmem:[%s3900_s8 + $0x28] sm:$0xff] }
 0xae5   : > { %1847 = vmatpush.bf16.msra.mxu0 %v3111_v29 }
 0xae7   : > { %v1513_v34 = vpop.f32.mrf.mxu0 }
 0xae8   : > { %v3122_v34 = vld [vmem:[%s3900_s8 + $0x18] sm:$0xff] }
 0xae9   : > { %2086 = vmatpush.bf16.msrb.mxu0 %v3126_v30 }
 0xaea   : > { %v3222_v35 = vpop.eup %3221 }
 0xaeb   : > { %v1520_v36 = vadd.f32 1.0, %v3222_v35  ;;  %v3121_v35 = vld [vmem:[%s3900_s8 + $0x10] sm:$0xff] }
 0xaed   : > { %3223 = vrcp.f32 %v1520_v36  ;;  %v1532_v40 = vand.u32 2147483648, %v1520_v36  ;;  %v1530_v42 = vand.u32 2147483647, %v1520_v36  ;;  %vm1526_vm2 = vweird.f32 %v1520_v36  ;;  %2087 = vmatpush.bf16.msrb.mxu0 %v3125_v31 }
 0xaef   : > { %v1533_v44 = vor.u32 1.1754944e-38, %v1532_v40  ;;  %vm1531_vm6 = vcmp.eq.f32.partialorder %v1530_v42, 8.507059e+37  ;;  %v3730_v40 = vstv %s2798_s20 }
 0xaf1   : > { %2088 = vmatpush.bf16.msrb.mxu0 %v3124_v32 }
 0xaf3   : > { %v3224_v37 = vpop.eup %3223 }
 0xaf4   : > { %v1522_v38 = vmul.f32 %v3224_v37, %v1520_v36  ;;  %vm1527_vm1 = vweird.f32 %v3224_v37  ;;  %v3120_v36 = vld [vmem:[%s3900_s8 + $0x8] sm:$0xff] }
 0xaf5   : > { %vm1528_vm5 = vmor %vm1526_vm2, %vm1527_vm1  ;;  %2089 = vmatpush.bf16.msrb.mxu0 %v3123_v33 }
 0xaf6   : > { %v1523_v39 = vsub.f32 1.0, %v1522_v38 }
 0xaf8   : > { %v1524_v41 = vmul.f32 %v3224_v37, %v1523_v39 }
 0xaf9   : > { %2090 = vmatpush.bf16.msrb.mxu0 %v3122_v34 }
 0xafa   : > { %v1525_v43 = vadd.f32 %v3224_v37, %v1524_v41  ;;  %v3119_v41 = vld [vmem:[%s3900_s8] sm:$0xff] }
 0xafc   : > { %v1529_v45 = vsel %vm1528_vm5, %v3224_v37, %v1525_v43  ;;  %v3110_v43 = vld [vmem:[%s3900_s8 + $0x98] sm:$0xff] }
 0xafd   : > { %v1534_v46 = vsel %vm1531_vm6, %v1533_v44, %v1529_v45  ;;  %2091 = vmatpush.bf16.msrb.mxu0 %v3121_v35  ;;  %1826 = vmatpush.bf16.msra.mxu3 %v3110_v43 }
 0xafe   : > { %1958 = vrot.lane.b32.xlu2 %v1534_v46, %s3254_s27  ;;  %v1536_v47 = vmul.f32 %v1534_v46, %v3452_v23 }
 0xb00   : > { %v1538_v48 = vrot.slane %v1536_v47, 6 }
 0xb01   : > { %2092 = vmatpush.bf16.msrb.mxu0 %v3120_v36 }
 0xb02   : > { %v1540_v49 = vsel %vm989_vm12, 0.0, %v1538_v48  ;;  %v1541_v50 = vsel %vm989_vm12, %v1538_v48, 0.0  ;;  %v3109_v48 = vld [vmem:[%s3900_s8 + $0x90] sm:$0xff] }
 0xb03   : > { %v1544_v51 = vrot.slane %v1540_v49, 1  ;;  %v1553_v52 = vrot.slane %v1540_v49, 2  ;;  %v1554_v53 = vrot.slane %v1541_v50, 2  ;;  %v1545_v54 = vrot.slane %v1541_v50, 1  ;;  %1827 = vmatpush.bf16.msra.mxu3 %v3109_v48 }
 0xb05   : > { %v1555_v55 = vsel %vm492_vm3, %v1553_v52, %v1554_v53  ;;  %v1546_v56 = vsel %vm433_vm0, %v1544_v51, %v1545_v54  ;;  %2093 = vmatpush.bf16.msrb.mxu0 %v3119_v41  ;;  %v3108_v52 = vld [vmem:[%s3900_s8 + $0x88] sm:$0xff] }
 0xb06   : > { %v1561_v57 = vpack.c.bf16 %v1554_v53, %v1555_v55  ;;  %v3181_v58 = vpack.i.bf16 %v1545_v54, %v1546_v56 }
 0xb07   : > { %1828 = vmatpush.bf16.msra.mxu3 %v3108_v52  ;;  %v3137_v52 = vld [vmem:[%s3900_s8 + $0x90] sm:$0xff] }
 0xb08   : > { %2797 = vmatmul.msk.bf16.vlgmr.msrb.gmra.mxu2 %vm498_vm4, %v1561_v57  ;;  %3182 = vrot.lane.b32.xlu1 %v3181_v58, %s3254_s27  ;;  %v3107_v57 = vld [vmem:[%s3900_s8 + $0x80] sm:$0xff] }
 0xb0b   : > { %1829 = vmatpush.bf16.msra.mxu3 %v3107_v57  ;;  %v3132_v57 = vld [vmem:[%s3900_s8 + $0x68] sm:$0xff] }
 0xb58   : > { %v1959_v2 = vpop.permute.xlu2 %1958 }
 0xb59   : > { %v1961_v3 = vmul.f32 %v1959_v2, %v3452_v23  ;;  %v3130_v23 = vld [vmem:[%s3900_s8 + $0x58] sm:$0xff] }
 0xb5a   : > { %2104 = vmatpush.bf16.msrb.mxu1 %v3130_v23  ;;  %v3106_v2 = vld [vmem:[%s3900_s8 + $0x78] sm:$0xff] }
 0xb5b   : > { %v1963_v4 = vrot.slane %v1961_v3, 6  ;;  %1830 = vmatpush.bf16.msra.mxu3 %v3106_v2  ;;  %v3105_v3 = vld [vmem:[%s3900_s8 + $0x70] sm:$0xff] }
 0xb5d   : > { %v3670_v6 = vsel %vm989_vm12, 0.0, %v1963_v4  ;;  %v3673_v7 = vsel %vm989_vm12, %v1963_v4, 0.0 }
 0xb5e   : > { %v1969_v8 = vrot.slane %v3670_v6, 1  ;;  %v1970_v9 = vrot.slane %v3673_v7, 1  ;;  %2105 = vmatpush.bf16.msrb.mxu1 %v3129_v12  ;;  %v1978_v21 = vrot.slane %v3670_v6, 2  ;;  %v1979_v22 = vrot.slane %v3673_v7, 2  ;;  %v3103_v12 = vld [vmem:[%s3900_s8 + $0x60] sm:$0xff] }
 0xb5f   : > { %1831 = vmatpush.bf16.msra.mxu3 %v3105_v3 }
 0xb60   : > { %v1971_v10 = vsel %vm433_vm0, %v1969_v8, %v1970_v9  ;;  %v1980_v24 = vsel %vm492_vm3, %v1978_v21, %v1979_v22  ;;  %v3139_v21 = vld [vmem:[%s3900_s8 + $0xa0] sm:$0xff] }
 0xb61   : > { %v3186_v11 = vpack.i.bf16 %v1970_v9, %v1971_v10  ;;  %v1986_v25 = vpack.c.bf16 %v1979_v22, %v1980_v24  ;;  %v3118_v22 = vld [vmem:[%s3901_s9 + $0x18] sm:$0xff] }
 0xb62   : > { %2106 = vmatpush.bf16.msrb.mxu1 %v3128_v13  ;;  %1902 = vmatpush.bf16.msra.mxu2 %v3118_v22 }
 0xb63   : > { %3187 = vrot.lane.b32.xlu2 %v3186_v11, %s3254_s27  ;;  %1832 = vmatpush.bf16.msra.mxu3 %v3104_v5 }
 0xb66   : > { %2107 = vmatpush.bf16.msrb.mxu1 %v3127_v14 }
 0xb67   : > { %1833 = vmatpush.bf16.msra.mxu3 %v3103_v12  ;;  %v3146_v12 = vld [vmem:[%s3901_s9 + $0x18] sm:$0xff] }
 0xb7a   : > { %v3183_v15 = vpop.permute.xlu1 %3182 }
 0xb7b   : > { %v3185_v16 = vunpack.i.h.bf16 %v3183_v15  ;;  %v3184_v17 = vunpack.i.l.bf16 %v3183_v15 }
 0xb7d   : > { %v1559_v18 = vsel %vm498_vm4, %v1541_v50, %v3185_v16  ;;  %v1558_v19 = vsel %vm498_vm4, %v1540_v49, %v3184_v17  ;;  %v3142_v16 = vld [vmem:[%s3900_s8 + $0xb8] sm:$0xff] }
 0xb7e   : > { %v1560_v20 = vpack.c.bf16 %v1559_v18, %v1558_v19  ;;  %2268 = vmatpush.bf16.msrb.mxu3 %v3142_v16  ;;  %v3140_v19 = vld [vmem:[%s3900_s8 + $0xa8] sm:$0xff] }
 0xb80   : > { %1669 = vmatmul.bf16.vlgmr.msra.gmra.mxu1 %v1560_v20 }
 0xb81   : > { %2326 = vmatpush.bf16.msra.mxu1 %v3146_v12 }
 0xb8b   : > { %v1684_v37 = vpop.f32.mrf.mxu2 }
 0xb90   : > { %2940 = vmatmul.msk.bf16.vlgmr.msrb.gmra.mxu1 %vm498_vm4, %v1986_v25  ;;  %v3117_v25 = vld [vmem:[%s3901_s9 + $0x10] sm:$0xff] }
 0xb91   : > { %1903 = vmatpush.bf16.msra.mxu2 %v3117_v25 }
 0xb93   : > { %v1686_v44 = vpop.f32.mrf.mxu2 }
 0xb95   : > { %1904 = vmatpush.bf16.msra.mxu2 %v3116_v26 }
 0xbbd   : > { %v3188_v4 = vpop.permute.xlu2 %3187 }
 0xbbe   : > { %v3190_v8 = vunpack.i.h.bf16 %v3188_v4  ;;  %v3189_v9 = vunpack.i.l.bf16 %v3188_v4 }
 0xbc0   : > { %v1984_v10 = vsel %vm498_vm4, %v3673_v7, %v3190_v8  ;;  %v1983_v23 = vsel %vm498_vm4, %v3670_v6, %v3189_v9  ;;  %v3141_v6 = vld [vmem:[%s3900_s8 + $0xb0] sm:$0xff] }
 0xbc1   : > { %v1985_v11 = vpack.c.bf16 %v1984_v10, %v1983_v23  ;;  %2269 = vmatpush.bf16.msrb.mxu3 %v3141_v6 }
 0xbc5   : > { %2270 = vmatpush.bf16.msrb.mxu3 %v3140_v19 }
 0xbc9   : > { %2271 = vmatpush.bf16.msrb.mxu3 %v3139_v21 }
 0xbfd   : > { %v1670_v38 = vpop.f32.mrf.mxu1 }
 0xbfe   : > { %v1685_v39 = vadd.f32 %v1684_v37, %v1670_v38 }
 0xc00   : > { %v1693_v42 = vmul.f32 %v3730_v40, %v1685_v39  ;;  %vm1690_vm7 = vcmp.ge.f32.partialorder %v1685_v39, 0.0 }
 0xc02   : > { %v1695_v45 = vsel %vm1690_vm7, %v1685_v39, %v1693_v42 }
 0xc03   : > { %v1699_v49 = vrot.slane %v1695_v45, 6 }
 0xc05   : > { %v1672_v46 = vpop.f32.mrf.mxu1  ;;  %v1704_v54 = vsel %vm989_vm12, 0.0, %v1699_v49 }
 0xc06   : > { %v1687_v47 = vadd.f32 %v1686_v44, %v1672_v46  ;;  %v1717_v58 = vrot.slane %v1704_v54, 2  ;;  %v1708_v60 = vrot.slane %v1704_v54, 1 }
 0xc08   : > { %vm1691_vm8 = vcmp.ge.f32.partialorder %v1687_v47, 0.0  ;;  %v1694_v50 = vmul.f32 %v3730_v40, %v1687_v47 }
 0xc0a   : > { %v1696_v51 = vsel %vm1691_vm8, %v1687_v47, %v1694_v50 }
 0xc0b   : > { %v1700_v53 = vrot.slane %v1696_v51, 6  ;;  %v3138_v51 = vld [vmem:[%s3900_s8 + $0x98] sm:$0xff] }
 0xc0d   : > { %v1701_v55 = vsel %vm989_vm12, %v1699_v49, %v1700_v53  ;;  %v2109_v27 = vpop.f32.mrf.mxu1  ;;  %v3136_v53 = vld [vmem:[%s3900_s8 + $0x88] sm:$0xff] }
 0xc0e   : > { %v1705_v56 = vsel %vm1011_vm13, %v1701_v55, 0.0  ;;  %v3134_v55 = vld [vmem:[%s3900_s8 + $0x78] sm:$0xff] }
 0xc0f   : > { %v1718_v59 = vrot.slane %v1705_v56, 2  ;;  %v1709_v61 = vrot.slane %v1705_v56, 1 }
 0xc11   : > { %v1719_v62 = vsel %vm492_vm3, %v1717_v58, %v1718_v59  ;;  %v1710_v63 = vsel %vm433_vm0, %v1708_v60, %v1709_v61  ;;  %v3131_v58 = vld [vmem:[%s3900_s8 + $0x60] sm:$0xff] }
 0xc12   : > { %v1725_v0 = vpack.c.bf16 %v1718_v59, %v1719_v62  ;;  %v3191_v1 = vpack.i.bf16 %v1709_v61, %v1710_v63  ;;  %v1857_v61 = vstv %s2872_s18 }
 0xc14   : > { %2871 = vmatmul.msk.bf16.vlgmr.msra.gmra.mxu0 %vm498_vm4, %v1725_v0  ;;  %3192 = vrot.lane.b32.xlu0 %v3191_v1, %s3254_s27 }
 0xc15   : > { %v2111_v31 = vpop.f32.mrf.mxu1 }
 0xc24   : > { %2094 = vmatmul.bf16.vlgmr.msrb.gmra.mxu0 %v1985_v11 }
 0xc86   : > { %v3193_v13 = vpop.permute.xlu0 %3192 }
 0xc87   : > { %v3195_v14 = vunpack.i.h.bf16 %v3193_v13  ;;  %v3194_v15 = vunpack.i.l.bf16 %v3193_v13  ;;  %v3145_v13 = vld [vmem:[%s3901_s9 + $0x10] sm:$0xff] }
 0xc88   : > { %2327 = vmatpush.bf16.msra.mxu1 %v3145_v13 }
 0xc89   : > { %v1723_v17 = vsel %vm498_vm4, %v1705_v56, %v3195_v14  ;;  %v1722_v7 = vsel %vm498_vm4, %v1704_v54, %v3194_v15  ;;  %v3135_v54 = vld [vmem:[%s3900_s8 + $0x80] sm:$0xff]  ;;  %v3133_v56 = vld [vmem:[%s3900_s8 + $0x70] sm:$0xff]  ;;  %v3144_v14 = vld [vmem:[%s3901_s9 + $0x8] sm:$0xff] }
 0xc8a   : > { %v1724_v18 = vpack.c.bf16 %v1723_v17, %v1722_v7  ;;  %v3143_v15 = vld [vmem:[%s3901_s9] sm:$0xff] }
 0xc8c   : > { %1834 = vmatmul.bf16.vlgmr.msra.gmra.mxu3 %v1724_v18  ;;  %2328 = vmatpush.bf16.msra.mxu1 %v3144_v14 }
 0xc90   : > { %2329 = vmatpush.bf16.msra.mxu1 %v3143_v15 }
 0xc91   : > { %v1849_v20 = vpop.f32.mrf.mxu0 }
 0xc99   : > { %v1851_v24 = vpop.f32.mrf.mxu0 }
 0xca1   : > { %v2095_v28 = vpop.f32.mrf.mxu0 }
 0xca2   : > { %v2110_v29 = vadd.f32 %v2109_v27, %v2095_v28 }
 0xca4   : > { %v2118_v30 = vmul.f32 %v2110_v29, %v3730_v40  ;;  %vm2115_vm10 = vcmp.ge.f32.partialorder %v2110_v29, 0.0 }
 0xca6   : > { %v2120_v32 = vsel %vm2115_vm10, %v2110_v29, %v2118_v30 }
 0xca7   : > { %v2124_v35 = vrot.slane %v2120_v32, 6 }
 0xca9   : > { %v2097_v33 = vpop.f32.mrf.mxu0  ;;  %v2129_v39 = vsel %vm989_vm12, 0.0, %v2124_v35 }
 0xcaa   : > { %v2112_v34 = vadd.f32 %v2111_v31, %v2097_v33  ;;  %v2142_v43 = vrot.slane %v2129_v39, 2  ;;  %v2133_v45 = vrot.slane %v2129_v39, 1 }
 0xcac   : > { %vm2116_vm11 = vcmp.ge.f32.partialorder %v2112_v34, 0.0  ;;  %v2119_v36 = vmul.f32 %v2112_v34, %v3730_v40  ;;  %v3115_v40 = vld [vmem:[%s3901_s9] sm:$0xff] }
 0xcad   : > { %1905 = vmatpush.bf16.msra.mxu2 %v3115_v40 }
 0xcae   : > { %v2121_v37 = vsel %vm2116_vm11, %v2112_v34, %v2119_v36 }
 0xcaf   : > { %v2125_v38 = vrot.slane %v2121_v37, 6 }
 0xcb1   : > { %v2126_v41 = vsel %vm989_vm12, %v2124_v35, %v2125_v38  ;;  %2250 = vmatpush.bf16.msrb.mxu2 %v3138_v51 }
 0xcb2   : > { %v2130_v42 = vsel %vm1011_vm13, %v2126_v41, 0.0 }
 0xcb3   : > { %v2143_v44 = vrot.slane %v2130_v42, 2  ;;  %v2134_v46 = vrot.slane %v2130_v42, 1 }
 0xcb5   : > { %v2144_v47 = vsel %vm492_vm3, %v2142_v43, %v2143_v44  ;;  %v2135_v48 = vsel %vm433_vm0, %v2133_v45, %v2134_v46  ;;  %2251 = vmatpush.bf16.msrb.mxu2 %v3137_v52 }
 0xcb6   : > { %v2150_v49 = vpack.c.bf16 %v2143_v44, %v2144_v47  ;;  %v3196_v50 = vpack.i.bf16 %v2134_v46, %v2135_v48 }
 0xcb8   : > { %3014 = vmatmul.msk.bf16.vlgmr.msrb.gmra.mxu3 %vm498_vm4, %v2150_v49  ;;  %3197 = vrot.lane.b32.xlu1 %v3196_v50, %s3254_s27 }
 0xcb9   : > { %2252 = vmatpush.bf16.msrb.mxu2 %v3136_v53 }
 0xcbd   : > { %2253 = vmatpush.bf16.msrb.mxu2 %v3135_v54 }
 0xcc1   : > { %2254 = vmatpush.bf16.msrb.mxu2 %v3134_v55 }
 0xcc5   : > { %2255 = vmatpush.bf16.msrb.mxu2 %v3133_v56 }
 0xcc9   : > { %2256 = vmatpush.bf16.msrb.mxu2 %v3132_v57 }
 0xccd   : > { %2257 = vmatpush.bf16.msrb.mxu2 %v3131_v58 }
 0xd0f   : > { %v1835_v59 = vpop.f32.mrf.mxu3 }
 0xd10   : > { %v1850_v60 = vadd.f32 %v1849_v20, %v1835_v59 }
 0xd12   : > { %v1858_v63 = vmul.f32 %v1857_v61, %v1850_v60  ;;  %vm1855_vm0 = vcmp.ge.f32.partialorder %v1850_v60, 0.0 }
 0xd14   : > { %v1860_v2 = vsel %vm1855_vm0, %v1850_v60, %v1858_v63 }
 0xd17   : > { %v1837_v62 = vpop.f32.mrf.mxu3 }
 0xd18   : > { %v1852_v0 = vadd.f32 %v1851_v24, %v1837_v62 }
 0xd1a   : > { %vm1856_vm3 = vcmp.ge.f32.partialorder %v1852_v0, 0.0  ;;  %v1859_v1 = vmul.f32 %v1857_v61, %v1852_v0 }
 0xd1c   : > { %v1861_v3 = vsel %vm1856_vm3, %v1852_v0, %v1859_v1 }
 0xd1d   : > { %v1862_v4 = vpack.c.bf16 %v1861_v3, %v1860_v2 }
 0xd1f   : > { %2889 = vmatmul.msk.bf16.vlgmr.msra.gmra.mxu2 %vm498_vm4, %v1862_v4 }
 0xd2a   : > { %v3198_v5 = vpop.permute.xlu1 %3197 }
 0xd2b   : > { %v3200_v8 = vunpack.i.h.bf16 %v3198_v5  ;;  %v3199_v9 = vunpack.i.l.bf16 %v3198_v5 }
 0xd2d   : > { %v2148_v10 = vsel %vm498_vm4, %v2130_v42, %v3200_v8  ;;  %v2147_v23 = vsel %vm498_vm4, %v2129_v39, %v3199_v9 }
 0xd2e   : > { %v2149_v11 = vpack.c.bf16 %v2148_v10, %v2147_v23 }
 0xd30   : > { %2258 = vmatmul.bf16.vlgmr.msrb.gmra.mxu2 %v2149_v11 }
 0xd3b   : > { %v2273_v19 = vpop.f32.mrf.mxu3 }
 0xd43   : > { %v2275_v22 = vpop.f32.mrf.mxu3 }
 0xda2   : > { %v1907_v16 = vpop.f32.mrf.mxu2 }
 0xda3   : > { %v1915_v17 = vrot.slane %v1907_v16, 7 }
 0xda5   : > { %1931 = vrot.lane.b32.xlu2 %v1915_v17, %s3255_s29 }
 0xdaa   : > { %v1909_v7 = vpop.f32.mrf.mxu2 }
 0xdab   : > { %v1916_v18 = vrot.slane %v1909_v7, 7  ;;  %v1912_v45 = vsel %vm1011_vm13, %v1909_v7, 0.0 }
 0xdad   : > { %v1917_v6 = vsel %vm881_vm9, %v1915_v17, %v1916_v18 }
 0xdae   : > { %1933 = vrot.lane.b32.xlu1 %v1917_v6, %s3255_s29 }
 0xdb3   : > { %v2259_v20 = vpop.f32.mrf.mxu2 }
 0xdb4   : > { %v2274_v21 = vadd.f32 %v2273_v19, %v2259_v20 }
 0xdb6   : > { %v2282_v25 = vmul.f32 %v2274_v21, %v1857_v61  ;;  %vm2279_vm12 = vcmp.ge.f32.partialorder %v2274_v21, 0.0 }
 0xdb8   : > { %v2284_v28 = vsel %vm2279_vm12, %v2274_v21, %v2282_v25 }
 0xdbb   : > { %v2261_v24 = vpop.f32.mrf.mxu2 }
 0xdbc   : > { %v2276_v26 = vadd.f32 %v2275_v22, %v2261_v24 }
 0xdbe   : > { %vm2280_vm14 = vcmp.ge.f32.partialorder %v2276_v26, 0.0  ;;  %v2283_v27 = vmul.f32 %v2276_v26, %v1857_v61 }
 0xdc0   : > { %v2285_v29 = vsel %vm2280_vm14, %v2276_v26, %v2283_v27 }
 0xdc1   : > { %v2286_v30 = vpack.c.bf16 %v2285_v29, %v2284_v28 }
 0xdc3   : > { %3032 = vmatmul.msk.bf16.vlgmr.msra.gmra.mxu1 %vm498_vm4, %v2286_v30  ;;  %vm1927_vm4 = vcmask 64512  }
 0xdff   : > { %v1932_v34 = vpop.permute.xlu2 %1931 }
 0xe00   : > { %v1936_v37 = vsel %vm881_vm9, 0.0, %v1932_v34 }
 0xe20   : > { %v1934_v31 = vpop.permute.xlu1 %1933 }
 0xe21   : > { %1940 = vrot.lane.b32.xlu1 %v1934_v31, %s3253_s15 }
 0xe29   : > { %1918 = vrot.lane.b32.xlu1 %v1915_v17, %s3256_s30 }
 0xe40   : > { %v2331_v32 = vpop.f32.mrf.mxu1 }
 0xe41   : > { %v2339_v33 = vrot.slane %v2331_v32, 7 }
 0xe43   : > { %2354 = vrot.lane.b32.xlu0 %v2339_v33, %s3255_s29 }
 0xe48   : > { %v2333_v35 = vpop.f32.mrf.mxu1 }
 0xe49   : > { %v2340_v36 = vrot.slane %v2333_v35, 7  ;;  %v2336_v49 = vsel %vm1011_vm13, %v2333_v35, 0.0 }
 0xe4b   : > { %1938 = vrot.lane.b32.xlu0 %v1936_v37, %s3253_s15  ;;  %v2341_v38 = vsel %vm881_vm9, %v2339_v33, %v2340_v36 }
 0xe4c   : > { %2356 = vrot.lane.b32.xlu2 %v2341_v38, %s3255_s29  ;;  %2344 = vrot.lane.b32.xlu1 %v2341_v38, %s3256_s30 }
 0xe93   : > { %v1941_v39 = vpop.permute.xlu1 %1940 }
 0xe94   : > { %v1945_v46 = vadd.f32 %v1941_v39, %v1912_v45 }
 0xe9b   : > { %v1919_v41 = vpop.permute.xlu1 %1918 }
 0xe9c   : > { %v1924_v42 = vsel %vm881_vm9, 0.0, %v1919_v41 }
 0xe9d   : > { %v1925_v43 = vadd.f32 %v1924_v42, %v1907_v16 }
 0xe9f   : > { %1928 = vst.msk [vmem:[%s3862_s17] sm:$0xff] %vm1927_vm4, %v1925_v43 }
 0xea6   : > { %v2357_v44 = vpop.permute.xlu2 %2356 }
 0xea7   : > { %2363 = vrot.lane.b32.xlu0 %v2357_v44, %s3253_s15 }
 0xeaf   : > { %1920 = vrot.lane.b32.xlu0 %v1917_v6, %s3256_s30 }
 0xeb5   : > { %v2355_v47 = vpop.permute.xlu0 %2354 }
 0xeb6   : > { %v2359_v48 = vsel %vm881_vm9, 0.0, %v2355_v47 }
 0xeb7   : > { %2361 = vrot.lane.b32.xlu2 %v2359_v48, %s3253_s15  ;;  %1950 = vrot.lane.b32.xlu0 %v1945_v46, %s3257_s22 }
 0xebd   : > { %v1939_v51 = vpop.permute.xlu0 %1938 }
 0xebe   : > { %v2345_v50 = vpop.permute.xlu1 %2344  ;;  %v1944_v52 = vadd.f32 %v1939_v51, %v1907_v16 }
 0xebf   : > { %v2350_v40 = vadd.f32 %v2345_v50, %v2336_v49  ;;  %2342 = vrot.lane.b32.xlu2 %v2339_v33, %s3256_s30 }
 0xec1   : > { %3034 = vst.msk [vmem:[%s3862_s17 + $0x28] sm:$0x1f] %vm1929_vm15, %v2350_v40 }
 0xec7   : > { %1948 = vrot.lane.b32.xlu2 %v1944_v52, %s3257_s22 }
 0xf11   : > { %v2362_v53 = vpop.permute.xlu2 %2361 }
 0xf12   : > { %v2367_v54 = vadd.f32 %v2362_v53, %v2331_v32 }
 0xf14   : > { %2371 = vrot.lane.b32.xlu1 %v2367_v54, %s3257_s22 }
 0xf19   : > { %v2364_v55 = vpop.permute.xlu0 %2363  ;;  %v2343_v56 = vpop.permute.xlu2 %2342 }
 0xf1a   : > { %v2368_v57 = vadd.f32 %v2364_v55, %v2336_v49  ;;  %v2348_v58 = vsel %vm881_vm9, 0.0, %v2343_v56 }
 0xf1b   : > { %v2349_v59 = vadd.f32 %v2348_v58, %v2331_v32 }
 0xf1c   : > { %2373 = vrot.lane.b32.xlu2 %v2368_v57, %s3257_s22 }
 0xf1d   : > { %3033 = vst.msk [vmem:[%s3862_s17 + $0x20] sm:$0xff] %vm1927_vm4, %v2349_v59 }
 0xf21   : > { %v1949_v60 = vpop.permute.xlu2 %1948  ;;  %v1921_v61 = vpop.permute.xlu0 %1920 }
 0xf22   : > { %2890 = vst.msk [vmem:[%s3862_s17 + $0x10] sm:$0xff] %vm1927_vm4, %v1949_v60  ;;  %v1926_v62 = vadd.f32 %v1921_v61, %v1912_v45 }
 0xf24   : > { %1930 = vst.msk [vmem:[%s3862_s17 + $0x8] sm:$0x1f] %vm1929_vm15, %v1926_v62 }
 0xf29   : > { %v1951_v63 = vpop.permute.xlu0 %1950 }
 0xf2a   : > { %2891 = vst.msk [vmem:[%s3862_s17 + $0x18] sm:$0x1f] %vm1929_vm15, %v1951_v63 }
 0xf76   : > { %v2374_v0 = vpop.permute.xlu2 %2373 }
 0xf77   : > { %3036 = vst.msk [vmem:[%s3862_s17 + $0x38] sm:$0x1f] %vm1929_vm15, %v2374_v0 }
 0xf86   : > { %v2372_v1 = vpop.permute.xlu1 %2371 }
 0xf87   : > { %3035 = vst.msk [vmem:[%s3862_s17 + $0x30] sm:$0xff] %vm1927_vm4, %v2372_v1 }
 0xf88 PF: > { %s23_s21 = sadd.s32 1, %s3250_s21  }
 0xf89   : > { %p20_p7 = scmp.ge.s32.totalorder %s23_s21, 4  }
 0xf8b   :  { %22 = sbr.rel (!%p20_p7) target bundleno = 1 (0x1), region = 123 }
 0xf90   :  { %2401 = vsyncpa [#allocation3], 1 }
 0xf91   :  { %2403 = vsyncpa [#allocation3 + $0x1], 1 }

</bundles_post_ra>
